<compile_context>
chip_gen: v6e
topology: v6e:2x2x1
jax: 0.10.0
libtpu: 0.0.40
codegen_flags: <defaults>
</compile_context>

<pallas_src>
import functools

import jax
import jax.numpy as jnp
from jax.experimental import pallas as pl
from jax.experimental.pallas import tpu as pltpu

H1 = 400
H2 = 300


def _round_up(x, m):
    return ((x + m - 1) // m) * m


def _has_bf16_vpu():
    """True on TPU generations with a bf16 elementwise (VPU) path (v6e/v7x)."""
    try:
        kind = jax.devices()[0].device_kind.lower()
    except Exception:
        return True
    return not any(f"v{n}" in kind for n in (2, 3, 4, 5))


def critic_kernel(x_ref, w1_ref, b1_ref, w2_ref, b2_ref, w3_ref, b3_ref, o_ref,
                  *, relu_bf16):
    # Transposed data flow (batch on lanes):
    #   x : [K,  bt] bf16      w1: [H1, K ] bf16   b1: [H1, 1] f32
    #   h1: [H1, bt]           w2: [H2, H1] bf16   b2: [H2, 1] f32
    #   h2: [H2, bt]           w3: [1,  H2] bf16   b3: [1,  1] f32
    #   o : [1,  bt] f32  (lane-dense output row)
    h1 = jnp.dot(w1_ref[...], x_ref[...],
                 preferred_element_type=jnp.float32) + b1_ref[...]
    if relu_bf16:
        h1 = jnp.maximum(h1.astype(jnp.bfloat16), 0.0)   # bf16 VALU (v6e/v7x)
    else:
        h1 = jnp.maximum(h1, 0.0).astype(jnp.bfloat16)   # f32 VALU (v5e)

    h2 = jnp.dot(w2_ref[...], h1,
                 preferred_element_type=jnp.float32) + b2_ref[...]
    if relu_bf16:
        h2 = jnp.maximum(h2.astype(jnp.bfloat16), 0.0)
    else:
        h2 = jnp.maximum(h2, 0.0).astype(jnp.bfloat16)

    # Final N=1 layer as a [1,H2] @ [H2,bt] MXU matmul -> already a lane-dense
    # (1, bt) row; no in-kernel transpose / relayout needed.
    o_ref[...] = jnp.dot(w3_ref[...], h2,
                         preferred_element_type=jnp.float32) + b3_ref[...]


def critic_forward(state, action, params, *, b_tile=2048, relu_bf16=None):
    """state: [B, state_dim], action: [B, action_dim] -> value: [B, 1] (f32)."""
    w1, b1, w2, b2, w3, b3 = params
    B, S = state.shape
    A = action.shape[1]
    K = S + A

    if relu_bf16 is None:
        relu_bf16 = _has_bf16_vpu()

    # --- tile selection -----------------------------------------------------
    n_tiles = pl.cdiv(B, b_tile)
    if n_tiles == 1 and B >= 256:
        n_tiles = 2                       # let both v7x TensorCores work
    if n_tiles > 1:
        bt = _round_up(pl.cdiv(B, n_tiles), 128)   # lane-dense out blocks
    else:
        bt = _round_up(B, 16)                      # bf16 sublane packing
    Bp = bt * n_tiles

    # --- build the transposed, fused input ----------------------------------
    x = jnp.concatenate([state, action], axis=1).astype(jnp.bfloat16)
    if Bp != B:
        x = jnp.pad(x, ((0, Bp - B), (0, 0)))
    xT = x.T                                        # [K, Bp], batch on lanes

    grid = (n_tiles,)

    def resident(shape):
        # Whole-array block, same index every grid step -> stays in VMEM.
        return pl.BlockSpec(shape, lambda i: (0, 0))

    flops = 2 * Bp * (K * H1 + H1 * H2 + H2)
    bytes_accessed = (
        xT.size * 2                                   # streamed activations
        + (w1.size + w2.size + w3.size) * 2           # bf16 weights
        + (b1.size + b2.size + b3.size) * 4           # f32 biases
        + Bp * 4                                      # f32 output row
    )

    kernel = functools.partial(critic_kernel, relu_bf16=relu_bf16)

    out = pl.pallas_call(
        kernel,
        out_shape=jax.ShapeDtypeStruct((1, Bp), jnp.float32),
        grid=grid,
        in_specs=[
            pl.BlockSpec((K, bt), lambda i: (0, i)),  # x^T tile (streamed)
            resident((H1, K)),                        # w1
            resident((H1, 1)),                        # b1 (column)
            resident((H2, H1)),                       # w2
            resident((H2, 1)),                        # b2 (column)
            resident((1, H2)),                        # w3 (row)
            resident((1, 1)),                         # b3
        ],
        out_specs=pl.BlockSpec((1, bt), lambda i: (0, i)),   # lane-dense
        compiler_params=pltpu.CompilerParams(
            dimension_semantics=("parallel",)),
        cost_estimate=pl.CostEstimate(
            flops=flops, transcendentals=0, bytes_accessed=bytes_accessed),
    )(xT, w1, b1, w2, b2, w3, b3)

    return out[0, :B].reshape(B, 1)


def init_critic_params(key, state_dim, action_dim):
    """PyTorch-style init: W ~ U(+/- 1/sqrt(fan_in)), stored as [out, in].

    Matmul weights are kept in bf16 (MXU-native); biases stay f32 as columns.
    """
    layer_dims = [(state_dim + action_dim, H1), (H1, H2), (H2, 1)]
    raw = []
    for i, (fan_in, fan_out) in enumerate(layer_dims):
        kw, kb = jax.random.split(jax.random.fold_in(key, i))
        bound = 1.0 / (fan_in ** 0.5)
        w = jax.random.uniform(kw, (fan_out, fan_in), jnp.float32, -bound, bound)
        b = jax.random.uniform(kb, (fan_out, 1), jnp.float32, -bound, bound)
        raw.append((w, b))
    (w1, b1), (w2, b2), (w3, b3) = raw
    return (w1.astype(jnp.bfloat16), b1,
            w2.astype(jnp.bfloat16), b2,
            w3.astype(jnp.bfloat16), b3)


def critic_reference(state, action, params):
    """Pure-JAX f32 reference (uses the same bf16-rounded weights)."""
    w1, b1, w2, b2, w3, b3 = params
    x = jnp.concatenate([state, action], axis=1).astype(jnp.float32)
    h1 = jnp.maximum(x @ w1.astype(jnp.float32).T + b1.T, 0.0)
    h2 = jnp.maximum(h1 @ w2.astype(jnp.float32).T + b2.T, 0.0)
    return h2 @ w3.astype(jnp.float32).T + b3.T


if __name__ == "__main__":
    key = jax.random.PRNGKey(0)
    batch, state_dim, action_dim = 2, 32, 8

    k_s, k_a, k_p = jax.random.split(key, 3)
    state = jax.random.normal(k_s, (batch, state_dim), jnp.float32)
    action = jax.random.normal(k_a, (batch, action_dim), jnp.float32)
    params = init_critic_params(k_p, state_dim, action_dim)

    value = critic_forward(state, action, params)
    jax.block_until_ready(value)

    ref = critic_reference(state, action, params)
    assert value.shape == (batch, 1), value.shape
    # bf16 matmul inputs / activations (f32 accumulation) vs f32 reference.
    assert jnp.allclose(value, ref, atol=3e-2, rtol=3e-2), (value, ref)

    print("KERNEL_OK")
</pallas_src>

<mosaic_0001>
module attributes {stable_mosaic.version = 11 : i64} {
  func.func @critic_kernel(%arg0: i32, %arg1: memref<40x16xbf16, #tpu.memory_space<vmem>>, %arg2: memref<400x40xbf16, #tpu.memory_space<vmem>>, %arg3: memref<400x1xf32, #tpu.memory_space<vmem>>, %arg4: memref<300x400xbf16, #tpu.memory_space<vmem>>, %arg5: memref<300x1xf32, #tpu.memory_space<vmem>>, %arg6: memref<1x300xbf16, #tpu.memory_space<vmem>>, %arg7: memref<1x1xf32, #tpu.memory_space<vmem>>, %arg8: memref<1x16xf32, #tpu.memory_space<vmem>>) attributes {dimension_semantics = [#tpu.dimension_semantics<parallel>], iteration_bounds = array<i64: 1>, scalar_prefetch = 0 : i64, scratch_operands = 0 : i64, tpu.core_type = #tpu.core_type<tc>, window_params = [{transform_indices = @transform_0, window_bounds = array<i64: 40, 16>}, {pipeline_mode = #tpu.pipeline_mode<synchronous>, transform_indices = @transform_1, window_bounds = array<i64: 400, 40>}, {pipeline_mode = #tpu.pipeline_mode<synchronous>, transform_indices = @transform_2, window_bounds = array<i64: 400, 1>}, {pipeline_mode = #tpu.pipeline_mode<synchronous>, transform_indices = @transform_3, window_bounds = array<i64: 300, 400>}, {pipeline_mode = #tpu.pipeline_mode<synchronous>, transform_indices = @transform_4, window_bounds = array<i64: 300, 1>}, {pipeline_mode = #tpu.pipeline_mode<synchronous>, transform_indices = @transform_5, window_bounds = array<i64: 1, 300>}, {pipeline_mode = #tpu.pipeline_mode<synchronous>, transform_indices = @transform_6, window_bounds = array<i64: 1, 1>}, {transform_indices = @transform_7, window_bounds = array<i64: 1, 16>}]} {
    %c0 = arith.constant 0 : index
    %c0_0 = arith.constant 0 : index
    %0 = vector.load %arg2[%c0, %c0_0] : memref<400x40xbf16, #tpu.memory_space<vmem>>, vector<400x40xbf16>
    %c0_1 = arith.constant 0 : index
    %c0_2 = arith.constant 0 : index
    %1 = vector.load %arg1[%c0_1, %c0_2] : memref<40x16xbf16, #tpu.memory_space<vmem>>, vector<40x16xbf16>
    %cst = arith.constant dense<0.000000e+00> : vector<400x16xf32>
    %2 = tpu.matmul %0, %1, %cst {dimension_numbers = #tpu.dot_dimension_numbers<[1], [0], [0], [1], [0, 0, 1, 1], [], []>} : vector<400x40xbf16>, vector<40x16xbf16>, vector<400x16xf32> -> vector<400x16xf32>
    %c0_3 = arith.constant 0 : index
    %c0_4 = arith.constant 0 : index
    %3 = vector.load %arg3[%c0_3, %c0_4] : memref<400x1xf32, #tpu.memory_space<vmem>>, vector<400x1xf32>
    %4 = vector.broadcast %3 : vector<400x1xf32> to vector<400x16xf32>
    %5 = arith.addf %2, %4 : vector<400x16xf32>
    %6 = arith.truncf %5 : vector<400x16xf32> to vector<400x16xbf16>
    %cst_5 = arith.constant 0.000000e+00 : bf16
    %7 = vector.broadcast %cst_5 : bf16 to vector<400x16xbf16>
    %8 = arith.maximumf %6, %7 : vector<400x16xbf16>
    %c0_6 = arith.constant 0 : index
    %c0_7 = arith.constant 0 : index
    %9 = vector.load %arg4[%c0_6, %c0_7] : memref<300x400xbf16, #tpu.memory_space<vmem>>, vector<300x400xbf16>
    %cst_8 = arith.constant dense<0.000000e+00> : vector<300x16xf32>
    %10 = tpu.matmul %9, %8, %cst_8 {dimension_numbers = #tpu.dot_dimension_numbers<[1], [0], [0], [1], [0, 0, 1, 1], [], []>} : vector<300x400xbf16>, vector<400x16xbf16>, vector<300x16xf32> -> vector<300x16xf32>
    %c0_9 = arith.constant 0 : index
    %c0_10 = arith.constant 0 : index
    %11 = vector.load %arg5[%c0_9, %c0_10] : memref<300x1xf32, #tpu.memory_space<vmem>>, vector<300x1xf32>
    %12 = vector.broadcast %11 : vector<300x1xf32> to vector<300x16xf32>
    %13 = arith.addf %10, %12 : vector<300x16xf32>
    %14 = arith.truncf %13 : vector<300x16xf32> to vector<300x16xbf16>
    %cst_11 = arith.constant 0.000000e+00 : bf16
    %15 = vector.broadcast %cst_11 : bf16 to vector<300x16xbf16>
    %16 = arith.maximumf %14, %15 : vector<300x16xbf16>
    %c0_12 = arith.constant 0 : index
    %c0_13 = arith.constant 0 : index
    %17 = vector.load %arg6[%c0_12, %c0_13] : memref<1x300xbf16, #tpu.memory_space<vmem>>, vector<1x300xbf16>
    %cst_14 = arith.constant dense<0.000000e+00> : vector<1x16xf32>
    %18 = tpu.matmul %17, %16, %cst_14 {dimension_numbers = #tpu.dot_dimension_numbers<[1], [0], [0], [1], [0, 0, 1, 1], [], []>} : vector<1x300xbf16>, vector<300x16xbf16>, vector<1x16xf32> -> vector<1x16xf32>
    %c0_15 = arith.constant 0 : index
    %c0_16 = arith.constant 0 : index
    %19 = vector.load %arg7[%c0_15, %c0_16] : memref<1x1xf32, #tpu.memory_space<vmem>>, vector<1x1xf32>
    %20 = vector.broadcast %19 : vector<1x1xf32> to vector<1x16xf32>
    %21 = arith.addf %18, %20 : vector<1x16xf32>
    %c0_17 = arith.constant 0 : index
    %c0_18 = arith.constant 0 : index
    %22 = vector.load %arg8[%c0_17, %c0_18] : memref<1x16xf32, #tpu.memory_space<vmem>>, vector<1x16xf32>
    tpu.vector_store %arg8[%c0_17, %c0_18], %21 {strides = array<i32>} : memref<1x16xf32, #tpu.memory_space<vmem>>, vector<1x16xf32>,
    return
  }
  func.func @transform_0(%arg0: i32) -> (i32, i32) {
    %c0_i32 = arith.constant 0 : i32
    %c0_i32_0 = arith.constant 0 : i32
    return %c0_i32, %arg0 : i32, i32
  }
  func.func @transform_1(%arg0: i32) -> (i32, i32) {
    %c0_i32 = arith.constant 0 : i32
    %c0_i32_0 = arith.constant 0 : i32
    %c0_i32_1 = arith.constant 0 : i32
    return %c0_i32, %c0_i32_0 : i32, i32
  }
  func.func @transform_2(%arg0: i32) -> (i32, i32) {
    %c0_i32 = arith.constant 0 : i32
    %c0_i32_0 = arith.constant 0 : i32
    %c0_i32_1 = arith.constant 0 : i32
    return %c0_i32, %c0_i32_0 : i32, i32
  }
  func.func @transform_3(%arg0: i32) -> (i32, i32) {
    %c0_i32 = arith.constant 0 : i32
    %c0_i32_0 = arith.constant 0 : i32
    %c0_i32_1 = arith.constant 0 : i32
    return %c0_i32, %c0_i32_0 : i32, i32
  }
  func.func @transform_4(%arg0: i32) -> (i32, i32) {
    %c0_i32 = arith.constant 0 : i32
    %c0_i32_0 = arith.constant 0 : i32
    %c0_i32_1 = arith.constant 0 : i32
    return %c0_i32, %c0_i32_0 : i32, i32
  }
  func.func @transform_5(%arg0: i32) -> (i32, i32) {
    %c0_i32 = arith.constant 0 : i32
    %c0_i32_0 = arith.constant 0 : i32
    %c0_i32_1 = arith.constant 0 : i32
    return %c0_i32, %c0_i32_0 : i32, i32
  }
  func.func @transform_6(%arg0: i32) -> (i32, i32) {
    %c0_i32 = arith.constant 0 : i32
    %c0_i32_0 = arith.constant 0 : i32
    %c0_i32_1 = arith.constant 0 : i32
    return %c0_i32, %c0_i32_0 : i32, i32
  }
  func.func @transform_7(%arg0: i32) -> (i32, i32) {
    %c0_i32 = arith.constant 0 : i32
    %c0_i32_0 = arith.constant 0 : i32
    return %c0_i32, %arg0 : i32, i32
  }
}

</mosaic_0001>

<bundles_post_ra>
// kernel: tpu_custom_call.1
= control target key start
LH: loop header
LB: loop body
LE: loop exit
PB: predicated region body
PF: predicated region fallthrough
CT: control target
= control target key end

     0   :  { %s3907_s0 = inlined_call_operand.vmem [shape: bf16[40,16], index: 0, kind: input, shape index: {}]   ;;  %s3908_s1 = inlined_call_operand.vmem [shape: bf16[400,40], index: 1, kind: input, shape index: {}]   ;;  %s3909_s2 = inlined_call_operand.vmem [shape: f32[400,1], index: 2, kind: input, shape index: {}]   ;;  %s3910_s3 = inlined_call_operand.vmem [shape: bf16[300,400], index: 3, kind: input, shape index: {}]   ;;  %s3911_s4 = inlined_call_operand.vmem [shape: f32[300,1], index: 4, kind: input, shape index: {}]   ;;  %s3912_s5 = inlined_call_operand.vmem [shape: bf16[1,300], index: 5, kind: input, shape index: {}]   ;;  %s3913_s6 = inlined_call_operand.<no memory space> [shape: f32[1,1], index: 6, kind: input, shape index: {}]   ;;  %s3914_s7 = inlined_call_operand.hbm [shape: f32[1,16], index: 7, kind: output, shape index: {}]  }
   0x1   :  { %v12_v0 = vstv %s3913_s6 }
   0x2   :  { %13 = vst [vmem:[#allocation2] sm:$0x1] %v12_v0 }
   0x3   :  { %v99_v1 = vld [vmem:[%s3909_s2 + $0x70] sm:$0xff]  ;;  %v97_v2 = vld [vmem:[%s3909_s2 + $0x60] sm:$0xff]  ;;  %v3917_v3 = vmov 0   ;;  %vm601_vm0 = vcmask 1043456   ;;  %v3915_v5 = vmov 0.0   ;;  %v100_v7 = vld [vmem:[%s3909_s2 + $0x78] sm:$0xff] }
   0x4   :  { %2492 = vset.pattern.permute.xlu1 %v3917_v3  ;;  %2491 = vset.pattern.permute.xlu0 %v3917_v3  ;;  %v2493_v4 = vld [vmem:[%s3907_s0 + $0x10] ss:$0 sps:$4 sm:$0xff]   ;;  %v98_v8 = vld [vmem:[%s3909_s2 + $0x68] sm:$0xff]  ;;  %v96_v10 = vld [vmem:[%s3909_s2 + $0x58] sm:$0xff]  ;;  %vm2659_vm1 = vmmov 0   ;;  %vm525_vm2 = vcmask 326656  }
   0x5   :  { %207 = vperm.xlu0 %2491, %v99_v1   ;;  %197 = vperm.xlu1 %2492, %v97_v2   ;;  %v603_v6 = vsel %vm601_vm0, %v2493_v4, 0  ;;  %v2494_v9 = vld [vmem:[%s3907_s0 + $0x8] sm:$0xff]   ;;  %v95_v11 = vld [vmem:[%s3909_s2 + $0x50] sm:$0xff]  ;;  %v2495_v12 = vld [vmem:[%s3907_s0] sm:$0xff]  }
   0x6   :  { %2364 = vmatprep.subr.bf16.mxu0 %v3915_v5  ;;  %2480 = vmatprep.subr.bf16.mxu1 %v3915_v5  ;;  %v94_v13 = vld [vmem:[%s3909_s2 + $0x48] sm:$0xff]  ;;  %v93_v14 = vld [vmem:[%s3909_s2 + $0x40] sm:$0xff]  ;;  %v2497_v16 = vld [vmem:[%s3908_s1 + $0x70] sm:$0xff]  }
   0x7   :  { %2365 = vmatpush3.bf16.msra.mxu0 %v603_v6  ;;  %2483 = vmatpush3.bf16.msra.mxu1 %v603_v6  ;;  %v2496_v15 = vld [vmem:[%s3908_s1] sm:$0xff]   ;;  %v92_v17 = vld [vmem:[%s3909_s2 + $0x38] sm:$0xff]  ;;  %v91_v18 = vld [vmem:[%s3909_s2 + $0x30] sm:$0xff] }
   0x8   :  { %2366 = vmatprep.subr.bf16.mxu0 %v3915_v5  ;;  %2481 = vmatprep.subr.bf16.mxu1 %v3915_v5  ;;  %v90_v19 = vld [vmem:[%s3909_s2 + $0x28] sm:$0xff]  ;;  %v89_v20 = vld [vmem:[%s3909_s2 + $0x20] sm:$0xff]  ;;  %v2499_v22 = vld [vmem:[%s3908_s1 + $0x78] sm:$0xff]  }
   0x9   :  { %212 = vperm.xlu0 %2491, %v100_v7   ;;  %202 = vperm.xlu1 %2492, %v98_v8   ;;  %v2498_v21 = vld [vmem:[%s3908_s1 + $0x8] sm:$0xff]   ;;  %v88_v23 = vld [vmem:[%s3909_s2 + $0x18] sm:$0xff]  ;;  %v87_v24 = vld [vmem:[%s3909_s2 + $0x10] sm:$0xff] }
   0xa   :  { %2370 = vmatprep.mubr.msk.bf16.mxu0 %vm2659_vm1, %v3915_v5  ;;  %2426 = vmatprep.mubr.msk.bf16.mxu1 %vm2659_vm1, %v3915_v5  ;;  %v86_v25 = vld [vmem:[%s3909_s2 + $0x8] sm:$0xff]  ;;  %v85_v26 = vld [vmem:[%s3909_s2] sm:$0xff]  ;;  %v2500_v27 = vld [vmem:[%s3908_s1 + $0x10] sm:$0xff]  }
   0xb   :  { %2367 = vmatpush3.bf16.msra.mxu0 %v2494_v9  ;;  %2484 = vmatpush3.bf16.msra.mxu1 %v2494_v9  ;;  %v2501_v28 = vld [vmem:[%s3908_s1 + $0x80] sm:$0xff]   ;;  %v132_v29 = vld [vmem:[%s3909_s2 + $0x178] sm:$0xff]  ;;  %v131_v30 = vld [vmem:[%s3909_s2 + $0x170] sm:$0xff] }
   0xc   :  { %2368 = vmatprep.subr.bf16.mxu0 %v3915_v5  ;;  %2482 = vmatprep.subr.bf16.mxu1 %v3915_v5  ;;  %v116_v31 = vld [vmem:[%s3909_s2 + $0xf8] sm:$0xff]  ;;  %v115_v32 = vld [vmem:[%s3909_s2 + $0xf0] sm:$0xff]  ;;  %v2503_v34 = vld [vmem:[%s3908_s1 + $0x88] sm:$0xff]  }
   0xd   :  { %192 = vperm.xlu1 %2492, %v96_v10   ;;  %187 = vperm.xlu0 %2491, %v95_v11   ;;  %v2502_v33 = vld [vmem:[%s3908_s1 + $0x18] sm:$0xff]   ;;  %v130_v35 = vld [vmem:[%s3909_s2 + $0x168] sm:$0xff]  ;;  %v129_v36 = vld [vmem:[%s3909_s2 + $0x160] sm:$0xff] }
   0xe   :  { %v114_v37 = vld [vmem:[%s3909_s2 + $0xe8] sm:$0xff]  ;;  %v113_v38 = vld [vmem:[%s3909_s2 + $0xe0] sm:$0xff]  ;;  %v2505_v40 = vld [vmem:[%s3908_s1 + $0x90] sm:$0xff]  }
   0xf   :  { %2369 = vmatpush3.bf16.msra.mxu0 %v2495_v12  ;;  %2485 = vmatpush3.bf16.msra.mxu1 %v2495_v12  ;;  %v2504_v39 = vld [vmem:[%s3908_s1 + $0x20] sm:$0xff]   ;;  %v128_v41 = vld [vmem:[%s3909_s2 + $0x158] sm:$0xff]  ;;  %v127_v42 = vld [vmem:[%s3909_s2 + $0x150] sm:$0xff] }
  0x10   :  { %1611 = vmatprep.subr.bf16.mxu1 %v3917_v3  ;;  %1796 = vmatprep.subr.bf16.mxu0 %v3917_v3  ;;  %v112_v43 = vld [vmem:[%s3909_s2 + $0xd8] sm:$0xff]  ;;  %v111_v44 = vld [vmem:[%s3909_s2 + $0xd0] sm:$0xff]  ;;  %v2506_v45 = vld [vmem:[%s3908_s1 + $0x28] sm:$0xff]  }
  0x11   :  { %182 = vperm.xlu1 %2492, %v94_v13   ;;  %177 = vperm.xlu0 %2491, %v93_v14   ;;  %v2507_v46 = vld [vmem:[%s3908_s1 + $0x98] sm:$0xff]   ;;  %v126_v47 = vld [vmem:[%s3909_s2 + $0x148] sm:$0xff]  ;;  %v125_v48 = vld [vmem:[%s3909_s2 + $0x140] sm:$0xff] }
  0x12   :  { %2371 = vmatmul.mubr.msk.bf16.vlgmr.msra.gmra.mxu0 %vm525_vm2, %v2496_v15  ;;  %2427 = vmatmul.mubr.msk.bf16.vlgmr.msra.gmra.mxu1 %vm525_vm2, %v2497_v16  ;;  %v110_v49 = vld [vmem:[%s3909_s2 + $0xc8] sm:$0xff]  ;;  %v109_v50 = vld [vmem:[%s3909_s2 + $0xc0] sm:$0xff]  ;;  %v2508_v51 = vld [vmem:[%s3908_s1 + $0x30] sm:$0xff]  }
  0x13   :  { %2374 = vmatprep.mubr.msk.bf16.mxu0 %vm2659_vm1, %v3915_v5  ;;  %2430 = vmatprep.mubr.msk.bf16.mxu1 %vm2659_vm1, %v3915_v5  ;;  %v2509_v52 = vld [vmem:[%s3908_s1 + $0xa0] sm:$0xff]   ;;  %v124_v53 = vld [vmem:[%s3909_s2 + $0x138] sm:$0xff]  ;;  %v123_v54 = vld [vmem:[%s3909_s2 + $0x130] sm:$0xff] }
  0x14   :  { %v108_v55 = vld [vmem:[%s3909_s2 + $0xb8] sm:$0xff]  ;;  %v107_v56 = vld [vmem:[%s3909_s2 + $0xb0] sm:$0xff]  ;;  %v2511_v58 = vld [vmem:[%s3908_s1 + $0xa8] sm:$0xff]  }
  0x15   :  { %172 = vperm.xlu1 %2492, %v92_v17   ;;  %167 = vperm.xlu0 %2491, %v91_v18   ;;  %v2510_v57 = vld [vmem:[%s3908_s1 + $0x38] sm:$0xff]   ;;  %v122_v59 = vld [vmem:[%s3909_s2 + $0x128] sm:$0xff]  ;;  %v121_v60 = vld [vmem:[%s3909_s2 + $0x120] sm:$0xff] }
  0x16   :  { %v106_v61 = vld [vmem:[%s3909_s2 + $0xa8] sm:$0xff]  ;;  %v105_v62 = vld [vmem:[%s3909_s2 + $0xa0] sm:$0xff]  ;;  %v2513_v0 = vld [vmem:[%s3908_s1 + $0xb0] sm:$0xff]  }
  0x17   :  { %v2512_v63 = vld [vmem:[%s3908_s1 + $0x40] sm:$0xff]   ;;  %v120_v1 = vld [vmem:[%s3909_s2 + $0x118] sm:$0xff]  ;;  %v119_v2 = vld [vmem:[%s3909_s2 + $0x110] sm:$0xff] }
  0x18   :  { %v104_v4 = vld [vmem:[%s3909_s2 + $0x98] sm:$0xff] }
  0x19   :  { %162 = vperm.xlu1 %2492, %v90_v19   ;;  %157 = vperm.xlu0 %2491, %v89_v20  }
  0x1a   :  { %2375 = vmatmul.mubr.msk.bf16.gmra.mxu0 %vm525_vm2, %v2498_v21  ;;  %2431 = vmatmul.mubr.msk.bf16.gmra.mxu1 %vm525_vm2, %v2499_v22 }
  0x1b   :  { %2378 = vmatprep.mubr.msk.bf16.mxu0 %vm2659_vm1, %v3915_v5  ;;  %2434 = vmatprep.mubr.msk.bf16.mxu1 %vm2659_vm1, %v3915_v5 }
  0x1d   :  { %152 = vperm.xlu1 %2492, %v88_v23   ;;  %147 = vperm.xlu0 %2491, %v87_v24  }
  0x21   :  { %142 = vperm.xlu1 %2492, %v86_v25   ;;  %137 = vperm.xlu0 %2491, %v85_v26  }
  0x22   :  { %2379 = vmatmul.mubr.msk.bf16.gmra.mxu0 %vm525_vm2, %v2500_v27  ;;  %2435 = vmatmul.mubr.msk.bf16.gmra.mxu1 %vm525_vm2, %v2501_v28 }
  0x23   :  { %2382 = vmatprep.mubr.msk.bf16.mxu0 %vm2659_vm1, %v3915_v5  ;;  %2438 = vmatprep.mubr.msk.bf16.mxu1 %vm2659_vm1, %v3915_v5 }
  0x25   :  { %372 = vperm.xlu1 %2492, %v132_v29   ;;  %367 = vperm.xlu0 %2491, %v131_v30  }
  0x29   :  { %292 = vperm.xlu1 %2492, %v116_v31   ;;  %287 = vperm.xlu0 %2491, %v115_v32  }
  0x2a   :  { %2383 = vmatmul.mubr.msk.bf16.gmra.mxu0 %vm525_vm2, %v2502_v33  ;;  %2439 = vmatmul.mubr.msk.bf16.gmra.mxu1 %vm525_vm2, %v2503_v34 }
  0x2b   :  { %2386 = vmatprep.mubr.msk.bf16.mxu0 %vm2659_vm1, %v3915_v5  ;;  %2442 = vmatprep.mubr.msk.bf16.mxu1 %vm2659_vm1, %v3915_v5 }
  0x2d   :  { %362 = vperm.xlu1 %2492, %v130_v35   ;;  %357 = vperm.xlu0 %2491, %v129_v36  }
  0x31   :  { %282 = vperm.xlu1 %2492, %v114_v37   ;;  %277 = vperm.xlu0 %2491, %v113_v38  }
  0x32   :  { %2387 = vmatmul.mubr.msk.bf16.gmra.mxu0 %vm525_vm2, %v2504_v39  ;;  %2443 = vmatmul.mubr.msk.bf16.gmra.mxu1 %vm525_vm2, %v2505_v40 }
  0x33   :  { %2390 = vmatprep.mubr.msk.bf16.mxu0 %vm2659_vm1, %v3915_v5  ;;  %2446 = vmatprep.mubr.msk.bf16.mxu1 %vm2659_vm1, %v3915_v5 }
  0x35   :  { %352 = vperm.xlu1 %2492, %v128_v41   ;;  %347 = vperm.xlu0 %2491, %v127_v42  }
  0x39   :  { %272 = vperm.xlu1 %2492, %v112_v43   ;;  %267 = vperm.xlu0 %2491, %v111_v44  }
  0x3a   :  { %2391 = vmatmul.mubr.msk.bf16.gmra.mxu0 %vm525_vm2, %v2506_v45  ;;  %2447 = vmatmul.mubr.msk.bf16.gmra.mxu1 %vm525_vm2, %v2507_v46 }
  0x3b   :  { %2394 = vmatprep.mubr.msk.bf16.mxu0 %vm2659_vm1, %v3915_v5  ;;  %2450 = vmatprep.mubr.msk.bf16.mxu1 %vm2659_vm1, %v3915_v5 }
  0x3d   :  { %342 = vperm.xlu1 %2492, %v126_v47   ;;  %337 = vperm.xlu0 %2491, %v125_v48  }
  0x41   :  { %262 = vperm.xlu1 %2492, %v110_v49   ;;  %257 = vperm.xlu0 %2491, %v109_v50  }
  0x42   :  { %2395 = vmatmul.mubr.msk.bf16.gmra.mxu0 %vm525_vm2, %v2508_v51  ;;  %2451 = vmatmul.mubr.msk.bf16.gmra.mxu1 %vm525_vm2, %v2509_v52 }
  0x43   :  { %2398 = vmatprep.mubr.msk.bf16.mxu0 %vm2659_vm1, %v3915_v5  ;;  %2454 = vmatprep.mubr.msk.bf16.mxu1 %vm2659_vm1, %v3915_v5 }
  0x45   :  { %332 = vperm.xlu1 %2492, %v124_v53   ;;  %327 = vperm.xlu0 %2491, %v123_v54  }
  0x49   :  { %252 = vperm.xlu1 %2492, %v108_v55   ;;  %247 = vperm.xlu0 %2491, %v107_v56  }
  0x4a   :  { %2399 = vmatmul.mubr.msk.bf16.gmra.mxu0 %vm525_vm2, %v2510_v57  ;;  %2455 = vmatmul.mubr.msk.bf16.gmra.mxu1 %vm525_vm2, %v2511_v58 }
  0x4b   :  { %2402 = vmatprep.mubr.msk.bf16.mxu0 %vm2659_vm1, %v3915_v5  ;;  %2458 = vmatprep.mubr.msk.bf16.mxu1 %vm2659_vm1, %v3915_v5 }
  0x4d   :  { %322 = vperm.xlu1 %2492, %v122_v59   ;;  %317 = vperm.xlu0 %2491, %v121_v60  }
  0x51   :  { %242 = vperm.xlu1 %2492, %v106_v61   ;;  %237 = vperm.xlu0 %2491, %v105_v62  }
  0x52   :  { %2403 = vmatmul.mubr.msk.bf16.gmra.mxu0 %vm525_vm2, %v2512_v63  ;;  %2459 = vmatmul.mubr.msk.bf16.gmra.mxu1 %vm525_vm2, %v2513_v0 }
  0x53   :  { %2406 = vmatprep.mubr.msk.bf16.mxu0 %vm2659_vm1, %v3915_v5  ;;  %2462 = vmatprep.mubr.msk.bf16.mxu1 %vm2659_vm1, %v3915_v5 }
  0x55   :  { %312 = vperm.xlu1 %2492, %v120_v1   ;;  %307 = vperm.xlu0 %2491, %v119_v2  }
  0x56   :  { %14 = vsyncpa [#allocation4], 0  ;;  %v103_v6 = vld [vmem:[%s3909_s2 + $0x90] sm:$0xff]  ;;  %v2514_v7 = vld [vmem:[%s3908_s1 + $0x48] sm:$0xff]   ;;  %vm1553_vm3 = vcmask 130048   ;;  %vm2060_vm4 = vcmask 1045504  }
  0x57   :  { %v2515_v8 = vld [vmem:[%s3908_s1 + $0xb8] sm:$0xff]   ;;  %v118_v9 = vld [vmem:[%s3909_s2 + $0x108] sm:$0xff]  ;;  %v117_v10 = vld [vmem:[%s3909_s2 + $0x100] sm:$0xff]  ;;  %vm2056_vm5 = vcmask 359424   ;;  %vm2144_vm6 = vcmask 122880  }
  0x58   :  { %v102_v11 = vld [vmem:[%s3909_s2 + $0x88] sm:$0xff]  ;;  %v101_v12 = vld [vmem:[%s3909_s2 + $0x80] sm:$0xff]  ;;  %v2516_v13 = vld [vmem:[%s3908_s1 + $0x50] sm:$0xff]  }
  0x59   :  { %232 = vperm.xlu1 %2492, %v104_v4   ;;  %227 = vperm.xlu0 %2491, %v103_v6   ;;  %v2517_v14 = vld [vmem:[%s3908_s1 + $0xc0] sm:$0xff]   ;;  %v134_v15 = vld [vmem:[%s3909_s2 + $0x188] sm:$0xff]  ;;  %v995_v17 = vld [vmem:[%s3911_s4 + $0xf8] sm:$0xff] }
  0x5a   :  { %2407 = vmatmul.mubr.msk.bf16.gmra.mxu0 %vm525_vm2, %v2514_v7  ;;  %2463 = vmatmul.mubr.msk.bf16.gmra.mxu1 %vm525_vm2, %v2515_v8  ;;  %v133_v16 = vld [vmem:[%s3909_s2 + $0x180] sm:$0xff]  ;;  %v994_v18 = vld [vmem:[%s3911_s4 + $0xf0] sm:$0xff]  ;;  %v2518_v19 = vld [vmem:[%s3908_s1 + $0x58] sm:$0xff]  }
  0x5b   :  { %2410 = vmatprep.mubr.msk.bf16.mxu0 %vm2659_vm1, %v3915_v5  ;;  %2466 = vmatprep.mubr.msk.bf16.mxu1 %vm2659_vm1, %v3915_v5  ;;  %v979_v20 = vld [vmem:[%s3911_s4 + $0x78] sm:$0xff]  ;;  %v978_v21 = vld [vmem:[%s3911_s4 + $0x70] sm:$0xff]  ;;  %v993_v22 = vld [vmem:[%s3911_s4 + $0xe8] sm:$0xff] }
  0x5c   :  { %v992_v23 = vld [vmem:[%s3911_s4 + $0xe0] sm:$0xff]  ;;  %v977_v25 = vld [vmem:[%s3911_s4 + $0x68] sm:$0xff]  ;;  %v991_v27 = vld [vmem:[%s3911_s4 + $0xd8] sm:$0xff] }
  0x5d   :  { %302 = vperm.xlu1 %2492, %v118_v9   ;;  %297 = vperm.xlu0 %2491, %v117_v10   ;;  %v2519_v24 = vld [vmem:[%s3908_s1 + $0x60] sm:$0xff]   ;;  %v990_v28 = vld [vmem:[%s3911_s4 + $0xd0] sm:$0xff]  ;;  %v2520_v29 = vld [vmem:[%s3908_s1 + $0x68] sm:$0xff]  }
  0x5e   :  { %v976_v26 = vld [vmem:[%s3911_s4 + $0x60] sm:$0xff]  ;;  %v975_v30 = vld [vmem:[%s3911_s4 + $0x58] sm:$0xff]  ;;  %v974_v31 = vld [vmem:[%s3911_s4 + $0x50] sm:$0xff] }
  0x5f   :  { %v989_v32 = vld [vmem:[%s3911_s4 + $0xc8] sm:$0xff]  ;;  %v988_v33 = vld [vmem:[%s3911_s4 + $0xc0] sm:$0xff]  ;;  %v987_v40 = vld [vmem:[%s3911_s4 + $0xb8] sm:$0xff] }
  0x60   :  { %v973_v36 = vld [vmem:[%s3911_s4 + $0x48] sm:$0xff]  ;;  %v972_v37 = vld [vmem:[%s3911_s4 + $0x40] sm:$0xff]  ;;  %v986_v41 = vld [vmem:[%s3911_s4 + $0xb0] sm:$0xff] }
  0x61   :  { %222 = vperm.xlu1 %2492, %v102_v11   ;;  %217 = vperm.xlu0 %2491, %v101_v12   ;;  %v971_v44 = vld [vmem:[%s3911_s4 + $0x38] sm:$0xff]  ;;  %v970_v45 = vld [vmem:[%s3911_s4 + $0x30] sm:$0xff]  ;;  %v985_v48 = vld [vmem:[%s3911_s4 + $0xa8] sm:$0xff] }
  0x62   :  { %2411 = vmatmul.mubr.msk.bf16.gmra.mxu0 %vm525_vm2, %v2516_v13  ;;  %2467 = vmatmul.mubr.msk.bf16.gmra.mxu1 %vm525_vm2, %v2517_v14  ;;  %v984_v49 = vld [vmem:[%s3911_s4 + $0xa0] sm:$0xff]  ;;  %v969_v52 = vld [vmem:[%s3911_s4 + $0x28] sm:$0xff]  ;;  %v983_v56 = vld [vmem:[%s3911_s4 + $0x98] sm:$0xff] }
  0x63   :  { %2414 = vmatprep.mubr.msk.bf16.mxu0 %vm2659_vm1, %v3915_v5  ;;  %v968_v53 = vld [vmem:[%s3911_s4 + $0x20] sm:$0xff]  ;;  %v982_v57 = vld [vmem:[%s3911_s4 + $0x90] sm:$0xff]  ;;  %v967_v60 = vld [vmem:[%s3911_s4 + $0x18] sm:$0xff] }
  0x64   :  { %v966_v61 = vld [vmem:[%s3911_s4 + $0x10] sm:$0xff]  ;;  %v981_v0 = vld [vmem:[%s3911_s4 + $0x88] sm:$0xff]  ;;  %v980_v1 = vld [vmem:[%s3911_s4 + $0x80] sm:$0xff] }
  0x65   :  { %382 = vperm.xlu1 %2492, %v134_v15   ;;  %377 = vperm.xlu0 %2491, %v133_v16   ;;  %v965_v6 = vld [vmem:[%s3911_s4 + $0x8] sm:$0xff]  ;;  %v964_v7 = vld [vmem:[%s3911_s4] sm:$0xff]  ;;  %v999_v14 = vld [vmem:[%s3911_s4 + $0x118] sm:$0xff] }
  0x66   :  { %v1001_v10 = vld [vmem:[%s3911_s4 + $0x128] sm:$0xf]  ;;  %v1000_v11 = vld [vmem:[%s3911_s4 + $0x120] sm:$0xff]  ;;  %v998_v15 = vld [vmem:[%s3911_s4 + $0x110] sm:$0xff] }
  0x69   :  { %1159 = vperm.xlu1 %2492, %v995_v17   ;;  %1154 = vperm.xlu0 %2491, %v994_v18   ;;  %v997_v18 = vld [vmem:[%s3911_s4 + $0x108] sm:$0xff] }
  0x6a   :  { %2415 = vmatmul.mubr.msk.bf16.gmra.mxu0 %vm525_vm2, %v2518_v19  ;;  %v996_v19 = vld [vmem:[%s3911_s4 + $0x100] sm:$0xff] }
  0x6b   :  { %2418 = vmatprep.mubr.msk.bf16.mxu0 %vm2659_vm1, %v3915_v5 }
  0x6d   :  { %1079 = vperm.xlu1 %2492, %v979_v20   ;;  %1074 = vperm.xlu0 %2491, %v978_v21  }
  0x71   :  { %1149 = vperm.xlu1 %2492, %v993_v22   ;;  %1144 = vperm.xlu0 %2491, %v992_v23   ;;  %v2020_v22 = vld [vmem:[#allocation2] sm:$0x1] }
  0x72   :  { %2419 = vmatmul.mubr.msk.bf16.gmra.mxu0 %vm525_vm2, %v2519_v24 }
  0x73   :  { %2422 = vmatprep.mubr.msk.bf16.mxu0 %vm2659_vm1, %v3915_v5 }
  0x75   :  { %1069 = vperm.xlu1 %2492, %v977_v25   ;;  %1064 = vperm.xlu0 %2491, %v976_v26  }
  0x79   :  { %1139 = vperm.xlu1 %2492, %v991_v27   ;;  %1134 = vperm.xlu0 %2491, %v990_v28  }
  0x7a   :  { %2423 = vmatmul.mubr.msk.bf16.gmra.mxu0 %vm525_vm2, %v2520_v29 }
  0x7d   :  { %1059 = vperm.xlu1 %2492, %v975_v30   ;;  %1054 = vperm.xlu0 %2491, %v974_v31  }
  0x80   :  { %v3066_v34 = vpop.permute.xlu0 %207  ;;  %v3068_v35 = vpop.permute.xlu1 %197 }
  0x81   :  { %1129 = vperm.xlu1 %2492, %v989_v32   ;;  %1124 = vperm.xlu0 %2491, %v988_v33  }
  0x84   :  { %v3076_v38 = vpop.permute.xlu0 %212  ;;  %v3078_v39 = vpop.permute.xlu1 %202 }
  0x85   :  { %1049 = vperm.xlu1 %2492, %v973_v36   ;;  %1044 = vperm.xlu0 %2491, %v972_v37  }
  0x88   :  { %v3086_v42 = vpop.permute.xlu1 %192  ;;  %v3088_v43 = vpop.permute.xlu0 %187 }
  0x89   :  { %1119 = vperm.xlu1 %2492, %v987_v40   ;;  %1114 = vperm.xlu0 %2491, %v986_v41  }
  0x8c   :  { %v3096_v46 = vpop.permute.xlu1 %182  ;;  %v3098_v47 = vpop.permute.xlu0 %177 }
  0x8d   :  { %1039 = vperm.xlu1 %2492, %v971_v44   ;;  %1034 = vperm.xlu0 %2491, %v970_v45  }
  0x90   :  { %v3106_v50 = vpop.permute.xlu1 %172  ;;  %v3108_v51 = vpop.permute.xlu0 %167 }
  0x91   :  { %1109 = vperm.xlu1 %2492, %v985_v48   ;;  %1104 = vperm.xlu0 %2491, %v984_v49  }
  0x94   :  { %v3116_v54 = vpop.permute.xlu1 %162  ;;  %v3118_v55 = vpop.permute.xlu0 %157 }
  0x95   :  { %1029 = vperm.xlu1 %2492, %v969_v52   ;;  %1024 = vperm.xlu0 %2491, %v968_v53   ;;  %v2523_v52 = vld [vmem:[%s3910_s3 + $0xc] ss:$16 sps:$4 sm:$0xff]  }
  0x96   :  { %2289 = vmatprep.mubr.msk.bf16.mxu0 %vm1553_vm3, %v2523_v52 }
  0x98   :  { %v3126_v58 = vpop.permute.xlu1 %152  ;;  %v3128_v59 = vpop.permute.xlu0 %147 }
  0x99   :  { %1099 = vperm.xlu1 %2492, %v983_v56   ;;  %1094 = vperm.xlu0 %2491, %v982_v57  }
  0x9c   :  { %v143_v62 = vpop.permute.xlu1 %142  ;;  %v138_v63 = vpop.permute.xlu0 %137 }
  0x9d   :  { %1019 = vperm.xlu1 %2492, %v967_v60   ;;  %1014 = vperm.xlu0 %2491, %v966_v61  }
  0xa0   :  { %v3142_v2 = vpop.permute.xlu1 %372  ;;  %v3144_v4 = vpop.permute.xlu0 %367 }
  0xa1   :  { %1089 = vperm.xlu1 %2492, %v981_v0   ;;  %1084 = vperm.xlu0 %2491, %v980_v1  }
  0xa4   :  { %v3152_v8 = vpop.permute.xlu1 %292  ;;  %v3154_v9 = vpop.permute.xlu0 %287 }
  0xa5   :  { %1009 = vperm.xlu1 %2492, %v965_v6   ;;  %1004 = vperm.xlu0 %2491, %v964_v7  }
  0xa8   :  { %v3162_v12 = vpop.permute.xlu1 %362  ;;  %v3164_v13 = vpop.permute.xlu0 %357 }
  0xa9   :  { %1189 = vperm.xlu1 %2492, %v1001_v10   ;;  %1184 = vperm.xlu0 %2491, %v1000_v11  }
  0xac   :  { %v283_v16 = vpop.permute.xlu1 %282  ;;  %v278_v17 = vpop.permute.xlu0 %277 }
  0xad   :  { %1179 = vperm.xlu1 %2492, %v999_v14   ;;  %1174 = vperm.xlu0 %2491, %v998_v15  }
  0xb0   :  { %v3178_v20 = vpop.permute.xlu1 %352  ;;  %v3180_v21 = vpop.permute.xlu0 %347 }
  0xb1   :  { %1169 = vperm.xlu1 %2492, %v997_v18   ;;  %1164 = vperm.xlu0 %2491, %v996_v19  }
  0xb4   :  { %v3182_v23 = vpop.permute.xlu1 %272  ;;  %v3184_v24 = vpop.permute.xlu0 %267 }
  0xb5   :  { %3928 = vst [vmem:[#allocation6_spill] sm:$0xff] %v3182_v23  ;;  %3929 = vst [vmem:[#allocation7_spill] sm:$0xff] %v3184_v24  ;;  %2023 = vperm.xlu0 %2491, %v2020_v22  }
  0xb8   :  { %v3186_v25 = vpop.permute.xlu1 %342  ;;  %v3188_v26 = vpop.permute.xlu0 %337 }
  0xbc   :  { %v3190_v27 = vpop.permute.xlu1 %262  ;;  %v3192_v28 = vpop.permute.xlu0 %257 }
  0xbd   :  { %3930 = vst [vmem:[#allocation8_spill] sm:$0xff] %v3190_v27  ;;  %3931 = vst [vmem:[#allocation9_spill] sm:$0xff] %v3192_v28 }
  0xc0   :  { %v3194_v29 = vpop.permute.xlu0 %327  ;;  %v3196_v30 = vpop.permute.xlu1 %332 }
  0xc4   :  { %v3198_v31 = vpop.permute.xlu0 %247  ;;  %v3200_v32 = vpop.permute.xlu1 %252 }
  0xc5   :  { %3932 = vst [vmem:[#allocation10_spill] sm:$0xff] %v3198_v31  ;;  %3933 = vst [vmem:[#allocation11_spill] sm:$0xff] %v3200_v32 }
  0xc8   :  { %v3202_v33 = vpop.permute.xlu0 %317  ;;  %v3204_v36 = vpop.permute.xlu1 %322 }
  0xcc   :  { %v3206_v37 = vpop.permute.xlu0 %237  ;;  %v3208_v44 = vpop.permute.xlu1 %242 }
  0xcd   :  { %3934 = vst [vmem:[#allocation12_spill] sm:$0xff] %v3206_v37  ;;  %3935 = vst [vmem:[#allocation13_spill] sm:$0xff] %v3208_v44 }
  0xd0   :  { %v308_v57 = vpop.permute.xlu0 %307  ;;  %v313_v7 = vpop.permute.xlu1 %312 }
  0xd2   :  { %v639_v40 = vpop.f32.mrf.mxu0  ;;  %v751_v41 = vpop.f32.mrf.mxu1 }
  0xd3   :  { %v3210_v49 = vadd.f32 %v751_v41, %v278_v17  ;;  %v3215_v60 = vadd.f32 %v639_v40, %v138_v63  ;;  %v2526_v63 = vld [vmem:[%s3910_s3 + $0x4] ss:$16 sps:$4 sm:$0xff]  }
  0xd4   :  { %v2372_v45 = vpop.f32.mrf.mxu0  ;;  %v2428_v48 = vpop.f32.mrf.mxu1  ;;  %1643 = vmatprep.mubr.bf16.mxu1 %v2526_v63 }
  0xd5   :  { %3936 = vst [vmem:[#allocation14_spill] sm:$0xff] %v3210_v49  ;;  %v3229_v17 = vpop.permute.xlu0 %227  ;;  %v3234_v40 = vpop.permute.xlu1 %232 }
  0xd6   :  { %v642_v53 = vpop.f32.mrf.mxu0  ;;  %v754_v56 = vpop.f32.mrf.mxu1  ;;  %3938 = vst [vmem:[#allocation16_spill] sm:$0xff] %v3229_v17  ;;  %3940 = vst [vmem:[#allocation18_spill] sm:$0xff] %v3234_v40 }
  0xd7   :  { %v3217_v61 = vadd.f32 %v642_v53, %v143_v62  ;;  %v3219_v0 = vadd.f32 %v754_v56, %v283_v16 }
  0xd8   :  { %v2373_v1 = vpop.f32.mrf.mxu0  ;;  %v2429_v6 = vpop.f32.mrf.mxu1 }
  0xd9   :  { %3937 = vst [vmem:[#allocation15_spill] sm:$0xff] %v3219_v0  ;;  %v298_v63 = vpop.permute.xlu0 %297 }
  0xda   :  { %v647_v14 = vpop.f32.mrf.mxu0  ;;  %v759_v62 = vpop.f32.mrf.mxu1 }
  0xdb   :  { %v3232_v18 = vadd.f32 %v759_v62, %v3154_v9  ;;  %v3237_v41 = vadd.f32 %v647_v14, %v3128_v59  ;;  %v303_v62 = vpop.permute.xlu1 %302 }
  0xdc   :  { %v2376_v15 = vpop.f32.mrf.mxu0  ;;  %v2432_v16 = vpop.f32.mrf.mxu1 }
  0xdd   :  { %3939 = vst [vmem:[#allocation17_spill] sm:$0xff] %v3232_v18 }
  0xde   :  { %v650_v19 = vpop.f32.mrf.mxu0  ;;  %v762_v22 = vpop.f32.mrf.mxu1 }
  0xdf   :  { %v3240_v45 = vadd.f32 %v650_v19, %v3126_v58  ;;  %v3243_v48 = vadd.f32 %v762_v22, %v3152_v8 }
  0xe0   :  { %v2377_v52 = vpop.f32.mrf.mxu0  ;;  %v2433_v53 = vpop.f32.mrf.mxu1 }
  0xe2   :  { %v3249_v1 = vpop.f32.mrf.mxu0  ;;  %v767_v6 = vpop.f32.mrf.mxu1 }
  0xe3   :  { %v3251_v58 = vadd.f32 %v767_v6, %v298_v63 }
  0xe4   :  { %v2380_v59 = vpop.f32.mrf.mxu0  ;;  %v2436_v14 = vpop.f32.mrf.mxu1 }
  0xe5   :  { %3941 = vst [vmem:[#allocation19_spill] sm:$0xff] %v3251_v58 }
  0xe6   :  { %v3253_v15 = vpop.f32.mrf.mxu0  ;;  %v770_v8 = vpop.f32.mrf.mxu1 }
  0xe7   :  { %v3255_v16 = vadd.f32 %v770_v8, %v303_v62 }
  0xe8   :  { %v2381_v19 = vpop.f32.mrf.mxu0  ;;  %v2437_v22 = vpop.f32.mrf.mxu1 }
  0xe9   :  { %3942 = vst [vmem:[#allocation20_spill] sm:$0xff] %v3255_v16 }
  0xea   :  { %v3259_v53 = vpop.f32.mrf.mxu0  ;;  %v775_v5 = vpop.f32.mrf.mxu1 }
  0xeb   :  { %v3261_v59 = vadd.f32 %v775_v5, %v308_v57 }
  0xec   :  { %v2384_v11 = vpop.f32.mrf.mxu0  ;;  %v2440_v9 = vpop.f32.mrf.mxu1 }
  0xed   :  { %3943 = vst [vmem:[#allocation21_spill] sm:$0xff] %v3261_v59 }
  0xee   :  { %v666_v14 = vpop.f32.mrf.mxu0  ;;  %v778_v6 = vpop.f32.mrf.mxu1 }
  0xef   :  { %v3263_v63 = vadd.f32 %v778_v6, %v313_v7 }
  0xf0   :  { %v2385_v10 = vpop.f32.mrf.mxu0  ;;  %v2441_v56 = vpop.f32.mrf.mxu1 }
  0xf1   :  { %3944 = vst [vmem:[#allocation22_spill] sm:$0xff] %v3263_v63 }
  0xf2   :  { %v671_v8 = vpop.f32.mrf.mxu0  ;;  %v3267_v19 = vpop.f32.mrf.mxu1 }
  0xf4   :  { %v2388_v22 = vpop.f32.mrf.mxu0  ;;  %v2444_v52 = vpop.f32.mrf.mxu1 }
  0xf6   :  { %v674_v3 = vpop.f32.mrf.mxu0  ;;  %v3269_v17 = vpop.f32.mrf.mxu1 }
  0xf8   :  { %v2389_v11 = vpop.f32.mrf.mxu0  ;;  %v2445_v5 = vpop.f32.mrf.mxu1 }
  0xfa   :  { %v679_v57 = vpop.f32.mrf.mxu0  ;;  %v3271_v9 = vpop.f32.mrf.mxu1 }
  0xfc   :  { %v2392_v7 = vpop.f32.mrf.mxu0  ;;  %v2448_v6 = vpop.f32.mrf.mxu1 }
  0xfe   :  { %v682_v10 = vpop.f32.mrf.mxu0  ;;  %v3273_v56 = vpop.f32.mrf.mxu1 }
  0xff   :  { %v683_v63 = vadd.f32 %v682_v10, %v3086_v42 }
 0x100   :  { %v2393_v40 = vpop.f32.mrf.mxu0  ;;  %v2449_v62 = vpop.f32.mrf.mxu1 }
 0x102   :  { %v687_v37 = vpop.f32.mrf.mxu0  ;;  %v3275_v44 = vpop.f32.mrf.mxu1 }
 0x103   :  { %v688_v16 = vadd.f32 %v687_v37, %v3068_v35  ;;  %v675_v35 = vadd.f32 %v674_v3, %v3096_v46  ;;  %v672_v37 = vadd.f32 %v671_v8, %v3098_v47  ;;  %v664_v3 = vadd.f32 %v3259_v53, %v3108_v51 }
 0x104   :  { %v2396_v22 = vpop.f32.mrf.mxu0  ;;  %v2452_v52 = vpop.f32.mrf.mxu1  ;;  %v659_v47 = vadd.f32 %v3253_v15, %v3116_v54  ;;  %v656_v53 = vadd.f32 %v3249_v1, %v3118_v55 }
 0x106   :  { %v690_v31 = vpop.f32.mrf.mxu0  ;;  %v3277_v32 = vpop.f32.mrf.mxu1 }
 0x107   :  { %v691_v40 = vadd.f32 %v690_v31, %v3078_v39  ;;  %v680_v39 = vadd.f32 %v679_v57, %v3088_v43 }
 0x108   :  { %v2397_v11 = vpop.f32.mrf.mxu0  ;;  %v2453_v5 = vpop.f32.mrf.mxu1 }
 0x10a   :  { %v695_v28 = vpop.f32.mrf.mxu0  ;;  %v3279_v23 = vpop.f32.mrf.mxu1 }
 0x10b   :  { %v696_v62 = vadd.f32 %v695_v28, %v3066_v34 }
 0x10c   :  { %v2400_v7 = vpop.f32.mrf.mxu0  ;;  %v2456_v6 = vpop.f32.mrf.mxu1 }
 0x10d   :  { %v844_v7 = vpack.c.bf16 %v691_v40, %v688_v16  ;;  %v3945_v6 = vmov 0  }
 0x10e   :  { %v698_v24 = vpop.f32.mrf.mxu0  ;;  %v810_v27 = vpop.f32.mrf.mxu1 }
 0x10f   :  { %v699_v58 = vadd.f32 %v698_v24, %v3076_v38  ;;  %v843_v24 = vpack.c.bf16 %v683_v63, %v680_v39  ;;  %v869_v28 = vmax.bf16 %v3945_v6, %v844_v7 }
 0x110   :  { %v2401_v22 = vpop.f32.mrf.mxu0  ;;  %v2457_v52 = vpop.f32.mrf.mxu1 }
 0x111   :  { %v845_v59 = vpack.c.bf16 %v699_v58, %v696_v62  ;;  %v868_v58 = vmax.bf16 %v3945_v6, %v843_v24  ;;  %v840_v62 = vpack.c.bf16 %v659_v47, %v656_v53  ;;  %v3951_v47 = vld [vmem:[#allocation14_spill] sm:$0xff]  ;;  %v3954_v53 = vld [vmem:[#allocation21_spill] sm:$0xff] }
 0x112   :  { %v3285_v11 = vpop.f32.mrf.mxu0  ;;  %v815_v5 = vpop.f32.mrf.mxu1 }
 0x113   :  { %v870_v49 = vmax.bf16 %v3945_v6, %v845_v59  ;;  %v816_v54 = vadd.f32 %v815_v5, %v3164_v13  ;;  %v808_v13 = vadd.f32 %v3279_v23, %v3180_v21  ;;  %v800_v21 = vadd.f32 %v3275_v44, %v3188_v26 }
 0x114   :  { %v2404_v0 = vpop.f32.mrf.mxu0  ;;  %v2460_v18 = vpop.f32.mrf.mxu1  ;;  %v792_v44 = vadd.f32 %v3271_v9, %v3194_v29  ;;  %v784_v29 = vadd.f32 %v3267_v19, %v3202_v33 }
 0x115   :  { %1612 = vmatpush1.bf16.msra.mxu1 %v870_v49  ;;  %v667_v0 = vadd.f32 %v666_v14, %v3106_v50  ;;  %v842_v49 = vpack.c.bf16 %v675_v35, %v672_v37  ;;  %v218_v33 = vpop.permute.xlu0 %217 }
 0x116   :  { %v3290_v34 = vpop.f32.mrf.mxu0  ;;  %v818_v38 = vpop.f32.mrf.mxu1  ;;  %1613 = vmatprep.subr.bf16.mxu1 %v3945_v6 }
 0x117   :  { %v841_v59 = vpack.c.bf16 %v667_v0, %v664_v3  ;;  %v867_v14 = vmax.bf16 %v3945_v6, %v842_v49  ;;  %v819_v8 = vadd.f32 %v818_v38, %v3162_v12  ;;  %v865_v38 = vmax.bf16 %v3945_v6, %v840_v62  ;;  %v223_v3 = vpop.permute.xlu1 %222 }
 0x118   :  { %v2405_v31 = vpop.f32.mrf.mxu0  ;;  %v2461_v42 = vpop.f32.mrf.mxu1 }
 0x119   :  { %1614 = vmatpush1.bf16.msra.mxu1 %v869_v28  ;;  %v860_v12 = vpack.c.bf16 %v819_v8, %v816_v54  ;;  %v3946_v31 = vpack.c.bf16 %v3240_v45, %v3237_v41  ;;  %v3947_v41 = vpack.c.bf16 %v3217_v61, %v3215_v60  ;;  %v3948_v60 = vld [vmem:[#allocation17_spill] sm:$0xff] }
 0x11a   :  { %v3297_v18 = vpop.f32.mrf.mxu0  ;;  %v823_v43 = vpop.f32.mrf.mxu1  ;;  %1615 = vmatprep.subr.bf16.mxu1 %v3945_v6  ;;  %v3949_v61 = vpack.c.bf16 %v3243_v48, %v3948_v60 }
 0x11b   :  { %v824_v57 = vadd.f32 %v823_v43, %v3144_v4  ;;  %v866_v4 = vmax.bf16 %v3945_v6, %v841_v59  ;;  %v885_v35 = vmax.bf16 %v3945_v6, %v860_v12  ;;  %v863_v45 = vmax.bf16 %v3945_v6, %v3947_v41  ;;  %v383_v8 = vpop.permute.xlu1 %382  ;;  %v3957_v12 = vld [vmem:[#allocation19_spill] sm:$0xff]  ;;  %v3964_v41 = vld [vmem:[#allocation10_spill] sm:$0xff] }
 0x11c   :  { %v2408_v46 = vpop.f32.mrf.mxu0  ;;  %v2464_v16 = vpop.f32.mrf.mxu1 }
 0x11d   :  { %1616 = vmatpush1.bf16.msra.mxu1 %v868_v58  ;;  %v878_v58 = vmax.bf16 %v3945_v6, %v3949_v61  ;;  %v3950_v16 = vld [vmem:[#allocation15_spill] sm:$0xff] }
 0x11e   :  { %v3305_v63 = vpop.f32.mrf.mxu0  ;;  %v826_v50 = vpop.f32.mrf.mxu1  ;;  %1617 = vmatprep.subr.bf16.mxu1 %v3945_v6  ;;  %v3952_v59 = vpack.c.bf16 %v3950_v16, %v3951_v47  ;;  %v704_v16 = vadd.f32 %v3285_v11, %v218_v33  ;;  %v2530_v33 = vld [vmem:[%s3910_s3 + $0x24] ss:$16 sps:$4 sm:$0xff]  }
 0x11f   :  { %v827_v51 = vadd.f32 %v826_v50, %v3142_v2  ;;  %v811_v2 = vadd.f32 %v810_v27, %v3178_v20  ;;  %v803_v20 = vadd.f32 %v3277_v32, %v3186_v25  ;;  %v864_v25 = vmax.bf16 %v3945_v6, %v3946_v31 }
 0x120   :  { %v2409_v10 = vpop.f32.mrf.mxu0  ;;  %v2465_v40 = vpop.f32.mrf.mxu1  ;;  %v795_v32 = vadd.f32 %v3273_v56, %v3196_v30  ;;  %v787_v30 = vadd.f32 %v3269_v17, %v3204_v36  ;;  %v877_v48 = vmax.bf16 %v3945_v6, %v3952_v59  ;;  %v2535_v59 = vld [vmem:[%s3910_s3 + $0x48] ss:$16 sps:$4 sm:$0xff]  }
 0x121   :  { %v861_v15 = vpack.c.bf16 %v827_v51, %v824_v57  ;;  %1618 = vmatpush1.bf16.msra.mxu1 %v867_v14  ;;  %v859_v27 = vpack.c.bf16 %v811_v2, %v808_v13  ;;  %v858_v42 = vpack.c.bf16 %v803_v20, %v800_v21  ;;  %v3953_v51 = vld [vmem:[#allocation22_spill] sm:$0xff]  ;;  %v3956_v2 = vld [vmem:[#allocation20_spill] sm:$0xff]  ;;  %v3962_v21 = vld [vmem:[#allocation9_spill] sm:$0xff] }
 0x122   :  { %v3315_v22 = vpop.f32.mrf.mxu0  ;;  %v3317_v52 = vpop.f32.mrf.mxu1  ;;  %1619 = vmatprep.subr.bf16.mxu1 %v3945_v6  ;;  %v857_v56 = vpack.c.bf16 %v795_v32, %v792_v44  ;;  %v856_v36 = vpack.c.bf16 %v787_v30, %v784_v29  ;;  %v3955_v10 = vpack.c.bf16 %v3953_v51, %v3954_v53  ;;  %v3963_v32 = vld [vmem:[#allocation11_spill] sm:$0xff]  ;;  %v3966_v29 = vld [vmem:[#allocation12_spill] sm:$0xff] }
 0x123   :  { %v886_v55 = vmax.bf16 %v3945_v6, %v861_v15  ;;  %v884_v37 = vmax.bf16 %v3945_v6, %v859_v27  ;;  %v883_v43 = vmax.bf16 %v3945_v6, %v858_v42  ;;  %v378_v15 = vpop.permute.xlu0 %377  ;;  %v3960_v27 = vld [vmem:[#allocation7_spill] sm:$0xff] }
 0x124   :  { %v2412_v1 = vpop.f32.mrf.mxu0  ;;  %v2468_v7 = vpop.f32.mrf.mxu1  ;;  %v882_v17 = vmax.bf16 %v3945_v6, %v857_v56  ;;  %v881_v50 = vmax.bf16 %v3945_v6, %v856_v36  ;;  %v880_v40 = vmax.bf16 %v3945_v6, %v3955_v10  ;;  %v2521_v44 = vld [vmem:[%s3910_s3 + $0x8] ss:$16 sps:$4 sm:$0xff]   ;;  %v2527_v30 = vld [vmem:[%s3910_s3 + $0x2c] ss:$16 sps:$4 sm:$0xff]   ;;  %v2538_v53 = vld [vmem:[%s3910_s3 + $0x40] ss:$16 sps:$4 sm:$0xff]  }
 0x125   :  { %1620 = vmatpush1.bf16.msra.mxu1 %v866_v4  ;;  %1797 = vmatpush1.bf16.msra.mxu0 %v886_v55  ;;  %v832_v4 = vadd.f32 %v3317_v52, %v378_v15  ;;  %v3958_v55 = vpack.c.bf16 %v3956_v2, %v3957_v12  ;;  %v3965_v56 = vld [vmem:[#allocation13_spill] sm:$0xff]  ;;  %v3968_v36 = vld [vmem:[#allocation16_spill] sm:$0xff] }
 0x126   :  { %v3325_v5 = vpop.f32.mrf.mxu0  ;;  %v834_v39 = vpop.f32.mrf.mxu1  ;;  %1621 = vmatprep.subr.bf16.mxu1 %v3945_v6  ;;  %1798 = vmatprep.subr.bf16.mxu0 %v3945_v6  ;;  %v2551_v51 = vld [vmem:[%s3910_s3 + $0xac] ss:$16 sps:$4 sm:$0xff]   ;;  %v2542_v10 = vld [vmem:[%s3910_s3 + $0x64] ss:$16 sps:$4 sm:$0xff]   ;;  %v2544_v15 = vld [vmem:[%s3910_s3 + $0x60] ss:$16 sps:$4 sm:$0xff]  }
 0x127   :  { %v835_v54 = vadd.f32 %v834_v39, %v383_v8  ;;  %v879_v1 = vmax.bf16 %v3945_v6, %v3958_v55  ;;  %v2536_v8 = vld [vmem:[%s3910_s3 + $0x44] ss:$16 sps:$4 sm:$0xff]   ;;  %v2563_v2 = vld [vmem:[%s3910_s3 + $0xec] ss:$16 sps:$4 sm:$0xff]   ;;  %v2550_v12 = vld [vmem:[%s3910_s3 + $0x80] ss:$16 sps:$4 sm:$0xff]  }
 0x128   :  { %v2413_v24 = vpop.f32.mrf.mxu0  ;;  %v2469_v28 = vpop.f32.mrf.mxu1  ;;  %v2554_v55 = vld [vmem:[%s3910_s3 + $0xa4] ss:$16 sps:$4 sm:$0xff]  }
 0x129   :  { %1622 = vmatpush1.bf16.msra.mxu1 %v865_v38  ;;  %1799 = vmatpush1.bf16.msra.mxu0 %v885_v35  ;;  %v862_v13 = vpack.c.bf16 %v835_v54, %v832_v4  ;;  %v3959_v38 = vld [vmem:[#allocation8_spill] sm:$0xff]  ;;  %v3961_v24 = vld [vmem:[#allocation6_spill] sm:$0xff]  ;;  %v2557_v54 = vld [vmem:[%s3910_s3 + $0xcc] ss:$16 sps:$4 sm:$0xff]  }
 0x12a   :  { %v3335_v23 = vpop.f32.mrf.mxu0  ;;  %1623 = vmatprep.subr.bf16.mxu1 %v3945_v6  ;;  %1800 = vmatprep.subr.bf16.mxu0 %v3945_v6  ;;  %v2559_v4 = vld [vmem:[%s3910_s3 + $0xc8] ss:$16 sps:$4 sm:$0xff]  }
 0x12c   :  { %v2416_v26 = vpop.f32.mrf.mxu0 }
 0x12d   :  { %1624 = vmatpush1.bf16.msra.mxu1 %v864_v25  ;;  %1801 = vmatpush1.bf16.msra.mxu0 %v884_v37  ;;  %v887_v25 = vmax.bf16 %v3945_v6, %v862_v13  ;;  %v2556_v13 = vld [vmem:[%s3910_s3 + $0xa0] ss:$16 sps:$4 sm:$0xff]  }
 0x12e   :  { %v730_v0 = vpop.f32.mrf.mxu0  ;;  %1625 = vmatprep.subr.bf16.mxu1 %v3945_v6  ;;  %1802 = vmatprep.subr.bf16.mxu0 %v3945_v6 }
 0x12f   :  { %v731_v42 = vadd.f32 %v730_v0, %v3963_v32  ;;  %v723_v0 = vadd.f32 %v3325_v5, %v3965_v56  ;;  %v2529_v5 = vld [vmem:[%s3910_s3 + $0x28] ss:$16 sps:$4 sm:$0xff]   ;;  %v2574_v32 = vld [vmem:[%s3910_s3 + $0x100] ss:$16 sps:$4 sm:$0xff]  }
 0x130   :  { %v2417_v49 = vpop.f32.mrf.mxu0  ;;  %v2586_v56 = vld [vmem:[%s3910_s3 + $0x140] ss:$16 sps:$4 sm:$0xff]  }
 0x131   :  { %1626 = vmatpush1.bf16.msra.mxu1 %v863_v45  ;;  %1803 = vmatpush1.bf16.msra.mxu0 %v883_v43  ;;  %v728_v45 = vadd.f32 %v3335_v23, %v3964_v41  ;;  %v3967_v23 = vld [vmem:[#allocation18_spill] sm:$0xff] }
 0x132   :  { %v735_v9 = vpop.f32.mrf.mxu0  ;;  %1627 = vmatprep.subr.bf16.mxu1 %v3945_v6  ;;  %1804 = vmatprep.subr.bf16.mxu0 %v3945_v6  ;;  %v715_v60 = vadd.f32 %v3305_v63, %v3967_v23  ;;  %v2584_v41 = vld [vmem:[%s3910_s3 + $0x144] ss:$16 sps:$4 sm:$0xff]   ;;  %v2607_v23 = vld [vmem:[%s3910_s3 + $0x1c8] ss:$16 sps:$4 sm:$0xff]  }
 0x133   :  { %v736_v31 = vadd.f32 %v735_v9, %v3962_v21  ;;  %v849_v43 = vpack.c.bf16 %v731_v42, %v728_v45  ;;  %v720_v9 = vadd.f32 %v3315_v22, %v3966_v29  ;;  %v2533_v22 = vld [vmem:[%s3910_s3 + $0x4c] ss:$16 sps:$4 sm:$0xff]   ;;  %v2568_v21 = vld [vmem:[%s3910_s3 + $0xe0] ss:$16 sps:$4 sm:$0xff]   ;;  %v2578_v42 = vld [vmem:[%s3910_s3 + $0x124] ss:$16 sps:$4 sm:$0xff]  }
 0x134   :  { %v2420_v46 = vpop.f32.mrf.mxu0  ;;  %v2595_v45 = vld [vmem:[%s3910_s3 + $0x188] ss:$16 sps:$4 sm:$0xff]   ;;  %v2592_v29 = vld [vmem:[%s3910_s3 + $0x160] ss:$16 sps:$4 sm:$0xff]  }
 0x135   :  { %1628 = vmatpush2.bf16.msra.mxu1 %v878_v58  ;;  %1805 = vmatpush1.bf16.msra.mxu0 %v882_v17  ;;  %v848_v61 = vpack.c.bf16 %v723_v0, %v720_v9  ;;  %v874_v58 = vmax.bf16 %v3945_v6, %v849_v43  ;;  %v712_v17 = vadd.f32 %v3297_v18, %v3968_v36  ;;  %v2590_v0 = vld [vmem:[%s3910_s3 + $0x164] ss:$16 sps:$4 sm:$0xff]   ;;  %v2601_v43 = vld [vmem:[%s3910_s3 + $0x1a8] ss:$16 sps:$4 sm:$0xff]   ;;  %v2620_v36 = vld [vmem:[%s3910_s3 + $0x20c] ss:$16 sps:$4 sm:$0xff]  }
 0x136   :  { %v738_v19 = vpop.f32.mrf.mxu0  ;;  %1629 = vmatprep.subr.bf16.mxu1 %v3945_v6  ;;  %1806 = vmatprep.subr.bf16.mxu0 %v3945_v6  ;;  %v707_v46 = vadd.f32 %v3290_v34, %v223_v3  ;;  %v2539_v34 = vld [vmem:[%s3910_s3 + $0x6c] ss:$16 sps:$4 sm:$0xff]   ;;  %v2524_v3 = vld [vmem:[%s3910_s3] ss:$16 sps:$4 sm:$0xff]   ;;  %v2596_v9 = vld [vmem:[%s3910_s3 + $0x184] ss:$16 sps:$4 sm:$0xff]  }
 0x137   :  { %v739_v20 = vadd.f32 %v738_v19, %v3959_v38  ;;  %v847_v63 = vpack.c.bf16 %v715_v60, %v712_v17  ;;  %v873_v19 = vmax.bf16 %v3945_v6, %v848_v61  ;;  %v2560_v38 = vld [vmem:[%s3910_s3 + $0xc4] ss:$16 sps:$4 sm:$0xff]   ;;  %v2611_v60 = vld [vmem:[%s3910_s3 + $0x1ec] ss:$16 sps:$4 sm:$0xff]   ;;  %v2598_v61 = vld [vmem:[%s3910_s3 + $0x180] ss:$16 sps:$4 sm:$0xff]  }
 0x138   :  { %v2421_v14 = vpop.f32.mrf.mxu0  ;;  %v846_v18 = vpack.c.bf16 %v707_v46, %v704_v16  ;;  %v2604_v17 = vld [vmem:[%s3910_s3 + $0x1a0] ss:$16 sps:$4 sm:$0xff]   ;;  %v2608_v46 = vld [vmem:[%s3910_s3 + $0x1c4] ss:$16 sps:$4 sm:$0xff]   ;;  %v2626_v16 = vld [vmem:[%s3910_s3 + $0x22c] ss:$16 sps:$4 sm:$0xff]  }
 0x139   :  { %1630 = vmatpush2.bf16.msra.mxu1 %v877_v48  ;;  %1807 = vmatpush1.bf16.msra.mxu0 %v881_v50  ;;  %v850_v37 = vpack.c.bf16 %v739_v20, %v736_v31  ;;  %v872_v47 = vmax.bf16 %v3945_v6, %v847_v63  ;;  %v2541_v48 = vld [vmem:[%s3910_s3 + $0x68] ss:$16 sps:$4 sm:$0xff]   ;;  %v2545_v50 = vld [vmem:[%s3910_s3 + $0x8c] ss:$16 sps:$4 sm:$0xff]   ;;  %v2532_v14 = vld [vmem:[%s3910_s3 + $0x20] ss:$16 sps:$4 sm:$0xff]  }
 0x13a   :  { %v743_v57 = vpop.f32.mrf.mxu0  ;;  %1808 = vmatprep.subr.bf16.mxu0 %v3945_v6  ;;  %1631 = vmatprep.subr.bf16.mxu1 %v3945_v6  ;;  %v871_v11 = vmax.bf16 %v3945_v6, %v846_v18  ;;  %v2571_v20 = vld [vmem:[%s3910_s3 + $0x108] ss:$16 sps:$4 sm:$0xff]   ;;  %v2572_v31 = vld [vmem:[%s3910_s3 + $0x104] ss:$16 sps:$4 sm:$0xff]  }
 0x13b   :  { %v744_v35 = vadd.f32 %v743_v57, %v3960_v27  ;;  %v875_v49 = vmax.bf16 %v3945_v6, %v850_v37  ;;  %v2547_v57 = vld [vmem:[%s3910_s3 + $0x88] ss:$16 sps:$4 sm:$0xff]   ;;  %v2575_v27 = vld [vmem:[%s3910_s3 + $0x12c] ss:$16 sps:$4 sm:$0xff]  }
 0x13c   :  { %v2424_v62 = vpop.f32.mrf.mxu0  ;;  %v2589_v37 = vld [vmem:[%s3910_s3 + $0x168] ss:$16 sps:$4 sm:$0xff]  }
 0x13d   :  { %1809 = vmatpush1.bf16.msra.mxu0 %v880_v40  ;;  %v2553_v40 = vld [vmem:[%s3910_s3 + $0xa8] ss:$16 sps:$4 sm:$0xff]   ;;  %v2548_v62 = vld [vmem:[%s3910_s3 + $0x84] ss:$16 sps:$4 sm:$0xff]  }
 0x13e   :  { %v746_v7 = vpop.f32.mrf.mxu0  ;;  %1810 = vmatprep.subr.bf16.mxu0 %v3945_v6  ;;  %v2622_v63 = vld [vmem:[%s3910_s3 + $0x208] ss:$16 sps:$4 sm:$0xff]  }
 0x13f   :  { %v747_v39 = vadd.f32 %v746_v7, %v3961_v24  ;;  %v2569_v7 = vld [vmem:[%s3910_s3 + $0x10c] ss:$16 sps:$4 sm:$0xff]   ;;  %v2566_v24 = vld [vmem:[%s3910_s3 + $0xe4] ss:$16 sps:$4 sm:$0xff]  }
 0x140   :  { %v2425_v28 = vpop.f32.mrf.mxu0 }
 0x141   :  { %v851_v52 = vpack.c.bf16 %v747_v39, %v744_v35  ;;  %1811 = vmatpush1.bf16.msra.mxu0 %v879_v1  ;;  %v2565_v1 = vld [vmem:[%s3910_s3 + $0xe8] ss:$16 sps:$4 sm:$0xff]   ;;  %v2562_v35 = vld [vmem:[%s3910_s3 + $0xc0] ss:$16 sps:$4 sm:$0xff]   ;;  %v2581_v28 = vld [vmem:[%s3910_s3 + $0x14c] ss:$16 sps:$4 sm:$0xff]  }
 0x142   :  { %1826 = vmatprep.subr.bf16.mxu0 %v3945_v6  ;;  %v2577_v39 = vld [vmem:[%s3910_s3 + $0x128] ss:$16 sps:$4 sm:$0xff]  }
 0x143   :  { %v876_v26 = vmax.bf16 %v3945_v6, %v851_v52  ;;  %v2583_v52 = vld [vmem:[%s3910_s3 + $0x148] ss:$16 sps:$4 sm:$0xff]  }
 0x145   :  { %1632 = vmatpush2.bf16.msra.mxu1 %v876_v26  ;;  %1827 = vmatpush2.bf16.msra.mxu0 %v887_v25  ;;  %v2587_v25 = vld [vmem:[%s3910_s3 + $0x16c] ss:$16 sps:$4 sm:$0xff]  }
 0x146   :  { %1633 = vmatprep.subr.bf16.mxu1 %v3945_v6  ;;  %v2593_v26 = vld [vmem:[%s3910_s3 + $0x18c] ss:$16 sps:$4 sm:$0xff]  }
 0x148   :  { %1829 = vmatmul.mubr.bf16.vlgmr.msra.gmra.mxu0 %v2521_v44  ;;  %v2580_v44 = vld [vmem:[%s3910_s3 + $0x120] ss:$16 sps:$4 sm:$0xff]  }
 0x149   :  { %1634 = vmatpush2.bf16.msra.mxu1 %v875_v49  ;;  %2290 = vmatprep.mubr.msk.bf16.mxu0 %vm1553_vm3, %v2527_v30  ;;  %v2599_v30 = vld [vmem:[%s3910_s3 + $0x1ac] ss:$16 sps:$4 sm:$0xff]  }
 0x14a   :  { %1635 = vmatprep.subr.bf16.mxu1 %v3945_v6  ;;  %v2605_v49 = vld [vmem:[%s3910_s3 + $0x1cc] ss:$16 sps:$4 sm:$0xff]  }
 0x14d   :  { %1636 = vmatpush2.bf16.msra.mxu1 %v874_v58  ;;  %v2602_v58 = vld [vmem:[%s3910_s3 + $0x1a4] ss:$16 sps:$4 sm:$0xff]  }
 0x14e   :  { %1637 = vmatprep.subr.bf16.mxu1 %v3945_v6 }
 0x150   :  { %1837 = vmatmul.mubr.bf16.gmra.mxu0 %v2529_v5  ;;  %v2613_v5 = vld [vmem:[%s3910_s3 + $0x1e8] ss:$16 sps:$4 sm:$0xff]  }
 0x151   :  { %1638 = vmatpush2.bf16.msra.mxu1 %v873_v19  ;;  %2291 = vmatprep.mubr.msk.bf16.mxu0 %vm1553_vm3, %v2533_v22  ;;  %v3607_v22 = vpop.permute.xlu0 %1154  ;;  %v3616_v19 = vpop.permute.xlu1 %1159 }
 0x152   :  { %1639 = vmatprep.subr.bf16.mxu1 %v3945_v6 }
 0x155   :  { %1640 = vmatpush2.bf16.msra.mxu1 %v872_v47  ;;  %v3621_v18 = vpop.permute.xlu0 %1074  ;;  %v2610_v47 = vld [vmem:[%s3910_s3 + $0x1c0] ss:$16 sps:$4 sm:$0xff]  }
 0x156   :  { %1641 = vmatprep.subr.bf16.mxu1 %v3945_v6 }
 0x158   :  { %1845 = vmatmul.mubr.bf16.gmra.mxu0 %v2535_v59  ;;  %v2614_v59 = vld [vmem:[%s3910_s3 + $0x1e4] ss:$16 sps:$4 sm:$0xff]  }
 0x159   :  { %1642 = vmatpush2.bf16.msra.mxu1 %v871_v11  ;;  %2292 = vmatprep.mubr.msk.bf16.mxu0 %vm1553_vm3, %v2539_v34  ;;  %v3630_v34 = vpop.permute.xlu1 %1079  ;;  %v2628_v11 = vld [vmem:[%s3910_s3 + $0x228] ss:$16 sps:$4 sm:$0xff]  }
 0x15c   :  { %1644 = vmatmul.mubr.bf16.vlgmr.msra.gmra.mxu1 %v2524_v3  ;;  %v3635_v3 = vpop.permute.xlu0 %1144 }
 0x15d   :  { %1651 = vmatprep.mubr.bf16.mxu1 %v2530_v33  ;;  %v2632_v33 = vld [vmem:[%s3910_s3 + $0x24c] ss:$16 sps:$4 sm:$0x3f]  }
 0x160   :  { %1853 = vmatmul.mubr.bf16.gmra.mxu0 %v2541_v48  ;;  %v2616_v48 = vld [vmem:[%s3910_s3 + $0x1e0] ss:$16 sps:$4 sm:$0xff]  }
 0x161   :  { %2293 = vmatprep.mubr.msk.bf16.mxu0 %vm1553_vm3, %v2545_v50  ;;  %v3643_v50 = vpop.permute.xlu1 %1149 }
 0x164   :  { %1652 = vmatmul.mubr.bf16.gmra.mxu1 %v2532_v14  ;;  %v2617_v14 = vld [vmem:[%s3910_s3 + $0x204] ss:$16 sps:$4 sm:$0xff]  }
 0x165   :  { %1659 = vmatprep.mubr.bf16.mxu1 %v2536_v8  ;;  %v3649_v8 = vpop.permute.xlu0 %1064 }
 0x168   :  { %1861 = vmatmul.mubr.bf16.gmra.mxu0 %v2547_v57  ;;  %v2634_v57 = vld [vmem:[%s3910_s3 + $0x248] ss:$16 sps:$4 sm:$0x3f]  }
 0x169   :  { %2294 = vmatprep.mubr.msk.bf16.mxu0 %vm1553_vm3, %v2551_v51  ;;  %v3654_v51 = vpop.permute.xlu1 %1069 }
 0x16c   :  { %1660 = vmatmul.mubr.bf16.gmra.mxu1 %v2538_v53  ;;  %v2619_v53 = vld [vmem:[%s3910_s3 + $0x200] ss:$16 sps:$4 sm:$0xff]  }
 0x16d   :  { %1667 = vmatprep.mubr.bf16.mxu1 %v2542_v10  ;;  %v3659_v10 = vpop.permute.xlu0 %1134 }
 0x170   :  { %1869 = vmatmul.mubr.bf16.gmra.mxu0 %v2553_v40  ;;  %v2625_v40 = vld [vmem:[%s3910_s3 + $0x224] ss:$16 sps:$4 sm:$0xff]  }
 0x171   :  { %2295 = vmatprep.mubr.msk.bf16.mxu0 %vm1553_vm3, %v2557_v54  ;;  %v3664_v54 = vpop.permute.xlu1 %1139 }
 0x174   :  { %1668 = vmatmul.mubr.bf16.gmra.mxu1 %v2544_v15  ;;  %v3666_v15 = vpop.permute.xlu0 %1054 }
 0x175   :  { %1675 = vmatprep.mubr.bf16.mxu1 %v2548_v62  ;;  %v2623_v62 = vld [vmem:[%s3910_s3 + $0x220] ss:$16 sps:$4 sm:$0xff]  }
 0x178   :  { %1877 = vmatmul.mubr.bf16.gmra.mxu0 %v2559_v4  ;;  %v2631_v4 = vld [vmem:[%s3910_s3 + $0x244] ss:$16 sps:$4 sm:$0x3f]  }
 0x179   :  { %2296 = vmatprep.mubr.msk.bf16.mxu0 %vm1553_vm3, %v2563_v2  ;;  %v3674_v2 = vpop.permute.xlu1 %1059 }
 0x17c   :  { %1676 = vmatmul.mubr.bf16.gmra.mxu1 %v2550_v12  ;;  %v3676_v12 = vpop.permute.xlu0 %1124 }
 0x17d   :  { %1683 = vmatprep.mubr.bf16.mxu1 %v2554_v55  ;;  %v2629_v55 = vld [vmem:[%s3910_s3 + $0x240] ss:$16 sps:$4 sm:$0x3f]  }
 0x180   :  { %1885 = vmatmul.mubr.bf16.gmra.mxu0 %v2565_v1  ;;  %v3681_v1 = vpop.permute.xlu1 %1129 }
 0x181   :  { %2297 = vmatprep.mubr.msk.bf16.mxu0 %vm1553_vm3, %v2569_v7  ;;  %v3683_v7 = vpop.permute.xlu0 %1044 }
 0x184   :  { %1684 = vmatmul.mubr.bf16.gmra.mxu1 %v2556_v13  ;;  %v3685_v13 = vpop.permute.xlu1 %1049 }
 0x185   :  { %1691 = vmatprep.mubr.bf16.mxu1 %v2560_v38  ;;  %v3687_v38 = vpop.permute.xlu0 %1114 }
 0x188   :  { %1893 = vmatmul.mubr.bf16.gmra.mxu0 %v2571_v20  ;;  %v3689_v20 = vpop.permute.xlu1 %1119 }
 0x189   :  { %2298 = vmatprep.mubr.msk.bf16.mxu0 %vm1553_vm3, %v2575_v27  ;;  %v3691_v27 = vpop.permute.xlu0 %1034 }
 0x18c   :  { %1692 = vmatmul.mubr.bf16.gmra.mxu1 %v2562_v35  ;;  %v3693_v35 = vpop.permute.xlu1 %1039 }
 0x18d   :  { %1699 = vmatprep.mubr.bf16.mxu1 %v2566_v24  ;;  %v3695_v24 = vpop.permute.xlu0 %1104 }
 0x190   :  { %1901 = vmatmul.mubr.bf16.gmra.mxu0 %v2577_v39  ;;  %v3697_v39 = vpop.permute.xlu1 %1109 }
 0x191   :  { %2299 = vmatprep.mubr.msk.bf16.mxu0 %vm1553_vm3, %v2581_v28  ;;  %v1025_v28 = vpop.permute.xlu0 %1024 }
 0x194   :  { %1700 = vmatmul.mubr.bf16.gmra.mxu1 %v2568_v21  ;;  %v1030_v21 = vpop.permute.xlu1 %1029 }
 0x195   :  { %1707 = vmatprep.mubr.bf16.mxu1 %v2572_v31 }
 0x198   :  { %1909 = vmatmul.mubr.bf16.gmra.mxu0 %v2583_v52  ;;  %v3699_v52 = vpop.permute.xlu0 %1094 }
 0x199   :  { %2300 = vmatprep.mubr.msk.bf16.mxu0 %vm1553_vm3, %v2587_v25 }
 0x19c   :  { %1708 = vmatmul.mubr.bf16.gmra.mxu1 %v2574_v32 }
 0x19d   :  { %1715 = vmatprep.mubr.bf16.mxu1 %v2578_v42  ;;  %v3701_v42 = vpop.permute.xlu1 %1099 }
 0x1a0   :  { %1917 = vmatmul.mubr.bf16.gmra.mxu0 %v2589_v37 }
 0x1a1   :  { %2301 = vmatprep.mubr.msk.bf16.mxu0 %vm1553_vm3, %v2593_v26  ;;  %v1015_v26 = vpop.permute.xlu0 %1014 }
 0x1a4   :  { %1716 = vmatmul.mubr.bf16.gmra.mxu1 %v2580_v44 }
 0x1a5   :  { %1723 = vmatprep.mubr.bf16.mxu1 %v2584_v41 }
 0x1a8   :  { %1925 = vmatmul.mubr.bf16.gmra.mxu0 %v2595_v45  ;;  %v1020_v45 = vpop.permute.xlu1 %1019 }
 0x1a9   :  { %2302 = vmatprep.mubr.msk.bf16.mxu0 %vm1553_vm3, %v2599_v30 }
 0x1ac   :  { %1724 = vmatmul.mubr.bf16.gmra.mxu1 %v2586_v56  ;;  %v3703_v56 = vpop.permute.xlu0 %1084 }
 0x1ad   :  { %1731 = vmatprep.mubr.bf16.mxu1 %v2590_v0 }
 0x1b0   :  { %1933 = vmatmul.mubr.bf16.gmra.mxu0 %v2601_v43 }
 0x1b1   :  { %2303 = vmatprep.mubr.msk.bf16.mxu0 %vm1553_vm3, %v2605_v49  ;;  %v3705_v49 = vpop.permute.xlu1 %1089 }
 0x1b4   :  { %1732 = vmatmul.mubr.bf16.gmra.mxu1 %v2592_v29 }
 0x1b5   :  { %1739 = vmatprep.mubr.bf16.mxu1 %v2596_v9  ;;  %v1005_v9 = vpop.permute.xlu0 %1004 }
 0x1b8   :  { %1941 = vmatmul.mubr.bf16.gmra.mxu0 %v2607_v23 }
 0x1b9   :  { %2304 = vmatprep.mubr.msk.bf16.mxu0 %vm1553_vm3, %v2611_v60 }
 0x1bc   :  { %1740 = vmatmul.mubr.bf16.gmra.mxu1 %v2598_v61 }
 0x1bd   :  { %1747 = vmatprep.mubr.bf16.mxu1 %v2602_v58 }
 0x1c0   :  { %1949 = vmatmul.mubr.bf16.gmra.mxu0 %v2613_v5 }
 0x1c1   :  { %2305 = vmatprep.mubr.msk.bf16.mxu0 %vm1553_vm3, %v2620_v36  ;;  %v1010_v36 = vpop.permute.xlu1 %1009 }
 0x1c4   :  { %1748 = vmatmul.mubr.bf16.gmra.mxu1 %v2604_v17 }
 0x1c5   :  { %1755 = vmatprep.mubr.bf16.mxu1 %v2608_v46 }
 0x1c8   :  { %1957 = vmatmul.mubr.bf16.gmra.mxu0 %v2622_v63 }
 0x1c9   :  { %2306 = vmatprep.mubr.msk.bf16.mxu0 %vm1553_vm3, %v2626_v16 }
 0x1cc   :  { %1756 = vmatmul.mubr.bf16.gmra.mxu1 %v2610_v47 }
 0x1cd   :  { %1763 = vmatprep.mubr.bf16.mxu1 %v2614_v59 }
 0x1d0   :  { %1965 = vmatmul.mubr.bf16.gmra.mxu0 %v2628_v11 }
 0x1d1   :  { %2307 = vmatprep.mubr.msk.bf16.mxu0 %vm1553_vm3, %v2632_v33 }
 0x1d4   :  { %1764 = vmatmul.mubr.bf16.gmra.mxu1 %v2616_v48 }
 0x1d5   :  { %1771 = vmatprep.mubr.bf16.mxu1 %v2617_v14 }
 0x1d8   :  { %1973 = vmatmul.mubr.bf16.gmra.mxu0 %v2634_v57 }
 0x1dc   :  { %1772 = vmatmul.mubr.bf16.gmra.mxu1 %v2619_v53 }
 0x1dd   :  { %1779 = vmatprep.mubr.bf16.mxu1 %v2625_v40 }
 0x1e4   :  { %1780 = vmatmul.mubr.bf16.gmra.mxu1 %v2623_v62 }
 0x1e5   :  { %1787 = vmatprep.mubr.bf16.mxu1 %v2631_v4 }
 0x1ec   :  { %1788 = vmatmul.mubr.bf16.gmra.mxu1 %v2629_v55 }
 0x208   :  { %v1830_v31 = vpop.f32.mrf.mxu0 }
 0x20a   :  { %v1832_v25 = vpop.f32.mrf.mxu0 }
 0x20c   :  { %v1833_v32 = vpop.f32.mrf.mxu0 }
 0x20e   :  { %v1835_v37 = vpop.f32.mrf.mxu0 }
 0x210   :  { %v1838_v44 = vpop.f32.mrf.mxu0 }
 0x212   :  { %v1840_v41 = vpop.f32.mrf.mxu0 }
 0x214   :  { %v1841_v30 = vpop.f32.mrf.mxu0 }
 0x216   :  { %v1843_v0 = vpop.f32.mrf.mxu0 }
 0x218   :  { %v1846_v43 = vpop.f32.mrf.mxu0 }
 0x21a   :  { %v1848_v29 = vpop.f32.mrf.mxu0 }
 0x21c   :  { %v1645_v23 = vpop.f32.mrf.mxu1  ;;  %v1849_v60 = vpop.f32.mrf.mxu0 }
 0x21d   :  { %v1646_v61 = vadd.f32 %v1645_v23, %v1005_v9 }
 0x21e   :  { %v1647_v58 = vpop.f32.mrf.mxu1  ;;  %v1851_v5 = vpop.f32.mrf.mxu0 }
 0x21f   :  { %v3707_v17 = vadd.f32 %v1830_v31, %v1646_v61 }
 0x220   :  { %v1648_v46 = vpop.f32.mrf.mxu1  ;;  %v1854_v63 = vpop.f32.mrf.mxu0 }
 0x221   :  { %v1649_v16 = vadd.f32 %v1648_v46, %v1010_v36 }
 0x222   :  { %v1650_v47 = vpop.f32.mrf.mxu1  ;;  %v1856_v59 = vpop.f32.mrf.mxu0 }
 0x223   :  { %v3709_v11 = vadd.f32 %v1833_v32, %v1649_v16 }
 0x224   :  { %v1653_v33 = vpop.f32.mrf.mxu1  ;;  %v1857_v48 = vpop.f32.mrf.mxu0 }
 0x225   :  { %v1654_v57 = vadd.f32 %v1653_v33, %v1015_v26  ;;  %v2026_v33 = vlaneseq }
 0x226   :  { %v1655_v53 = vpop.f32.mrf.mxu1  ;;  %v1859_v40 = vpop.f32.mrf.mxu0 }
 0x227   :  { %v3713_v62 = vadd.f32 %v1838_v44, %v1654_v57 }
 0x228   :  { %v1656_v4 = vpop.f32.mrf.mxu1  ;;  %v1862_v55 = vpop.f32.mrf.mxu0 }
 0x229   :  { %v1657_v31 = vadd.f32 %v1656_v4, %v1020_v45  ;;  %v2660_v4 = vmov 1966171168  }
 0x22a   :  { %v1658_v25 = vpop.f32.mrf.mxu1  ;;  %v1864_v37 = vpop.f32.mrf.mxu0 }
 0x22b   :  { %v3715_v41 = vadd.f32 %v1841_v30, %v1657_v31 }
 0x22c   :  { %v1661_v0 = vpop.f32.mrf.mxu1  ;;  %v1865_v32 = vpop.f32.mrf.mxu0 }
 0x22d   :  { %v1662_v9 = vadd.f32 %v1661_v0, %v1025_v28 }
 0x22e   :  { %v1663_v23 = vpop.f32.mrf.mxu1  ;;  %v1867_v61 = vpop.f32.mrf.mxu0 }
 0x22f   :  { %v3719_v26 = vadd.f32 %v1846_v43, %v1662_v9 }
 0x230   :  { %v1664_v58 = vpop.f32.mrf.mxu1  ;;  %v1870_v44 = vpop.f32.mrf.mxu0 }
 0x231   :  { %v1665_v5 = vadd.f32 %v1664_v58, %v1030_v21  ;;  %v2040_v21 = vunpack.c.l.s4 %v2660_v4 }
 0x232   :  { %v1666_v36 = vpop.f32.mrf.mxu1  ;;  %v1872_v46 = vpop.f32.mrf.mxu0 }
 0x233   :  { %v3721_v45 = vadd.f32 %v1849_v60, %v1665_v5  ;;  %v3729_v60 = vshrl.u32 %v2026_v33, 7  ;;  %v2041_v0 = vunpack.c.0.s8 %v2040_v21 }
 0x234   :  { %v1669_v16 = vpop.f32.mrf.mxu1  ;;  %v1873_v30 = vpop.f32.mrf.mxu0 }
 0x235   :  { %v1670_v59 = vadd.f32 %v1669_v16, %v3691_v27  ;;  %3969 = vst [vmem:[#allocation17_spill] sm:$0xff] %v3729_v60  ;;  %v2308_v27 = vld.sshfl [vmem:[%s3912_s5] sm:$0x13 pattern:$0x75316420]  ;;  %v2044_v58 = vsub.s32 %v2041_v0, %v3729_v60  ;;  %s2661_s5 = smov [#allocation3]  }
 0x236   :  { %v1671_v28 = vpop.f32.mrf.mxu1  ;;  %v1875_v57 = vpop.f32.mrf.mxu0  ;;  %v2038_v61 = vcombine.high %v2308_v27, %v2308_v27  ;;  %s2152_s14 = sshll.u32 %s2661_s5, 4  ;;  %s2153_s14 = int_to_ptr.vmem [resolvable:$true] %s2152_s14 }
 0x237   :  { %v3726_v53 = vadd.f32 %v1854_v63, %v1670_v59  ;;  %v3740_v16 = vrot.slane %v2308_v27, %v2044_v58  ;;  %s2635_s15 = scalar_lea.vmem %s2153_s14, 16  ;;  %s2639_s16 = scalar_lea.vmem %s2153_s14, 32 }
 0x238   :  { %v1672_v43 = vpop.f32.mrf.mxu1  ;;  %v1878_v40 = vpop.f32.mrf.mxu0  ;;  %p2636_p0 = scmp.ne.s32.totalorder %s2153_s14, %s2635_s15  ;;  %p2640_p1 = scmp.lt.s32.totalorder %s2153_s14, %s2153_s14 }
 0x239   :  { %v1673_v31 = vadd.f32 %v1672_v43, %v3693_v35  ;;  %3970 = vst [vmem:[#allocation15_spill] sm:$0xff] %v3740_v16  ;;  %p2641_p2 = scmp.lt.s32.totalorder %s2639_s16, %s2635_s15 }
 0x23a   :  { %v1674_v25 = vpop.f32.mrf.mxu1  ;;  %v1880_v37 = vpop.f32.mrf.mxu0 }
 0x23b   :  { %v3731_v9 = vadd.f32 %v1857_v48, %v1673_v31  ;;  %v2052_v48 = vrot.slane %v2038_v61, %v2044_v58  ;;  %p2642_p3 = por %p2641_p2, %p2640_p1 }
 0x23c   :  { %v1677_v23 = vpop.f32.mrf.mxu1  ;;  %v1881_v63 = vpop.f32.mrf.mxu0 }
 0x23d   :  { %v1678_v35 = vadd.f32 %v1677_v23, %v3683_v7  ;;  %2096 = vmatprep.mubr.bf16.mxu1 %v2052_v48  ;;  %p2643_p4 = pnand %p2642_p3, %p2636_p0 }
 0x23e   :  { %v1679_v36 = vpop.f32.mrf.mxu1  ;;  %v1883_v46 = vpop.f32.mrf.mxu0 }
 0x23f   :  { %v3742_v59 = vadd.f32 %v1862_v55, %v1678_v35 }
 0x240   :  { %v1680_v33 = vpop.f32.mrf.mxu1  ;;  %v1886_v28 = vpop.f32.mrf.mxu0 }
 0x241   :  { %v1681_v57 = vadd.f32 %v1680_v33, %v3685_v13 }
 0x242   :  { %v1682_v43 = vpop.f32.mrf.mxu1  ;;  %v1888_v4 = vpop.f32.mrf.mxu0 }
 0x243   :  { %v3745_v21 = vadd.f32 %v1865_v32, %v1681_v57 }
 0x244   :  { %v1685_v31 = vpop.f32.mrf.mxu1  ;;  %v1889_v25 = vpop.f32.mrf.mxu0 }
 0x245   :  { %v1686_v37 = vadd.f32 %v1685_v31, %v3666_v15 }
 0x246   :  { %v1687_v0 = vpop.f32.mrf.mxu1  ;;  %v1891_v27 = vpop.f32.mrf.mxu0 }
 0x247   :  { %v3750_v55 = vadd.f32 %v1870_v44, %v1686_v37 }
 0x248   :  { %v1688_v23 = vpop.f32.mrf.mxu1  ;;  %v1894_v61 = vpop.f32.mrf.mxu0 }
 0x249   :  { %v1689_v58 = vadd.f32 %v1688_v23, %v3674_v2 }
 0x24a   :  { %v1690_v13 = vpop.f32.mrf.mxu1  ;;  %v1896_v35 = vpop.f32.mrf.mxu0 }
 0x24b   :  { %v3753_v36 = vadd.f32 %v1873_v30, %v1689_v58 }
 0x24c   :  { %v1693_v32 = vpop.f32.mrf.mxu1  ;;  %v1897_v46 = vpop.f32.mrf.mxu0 }
 0x24d   :  { %v1694_v33 = vadd.f32 %v1693_v32, %v3649_v8 }
 0x24e   :  { %v1695_v15 = vpop.f32.mrf.mxu1  ;;  %v1899_v57 = vpop.f32.mrf.mxu0 }
 0x24f   :  { %v3758_v43 = vadd.f32 %v1878_v40, %v1694_v33 }
 0x250   :  { %v1696_v44 = vpop.f32.mrf.mxu1  ;;  %v1902_v4 = vpop.f32.mrf.mxu0 }
 0x251   :  { %v1697_v31 = vadd.f32 %v1696_v44, %v3654_v51 }
 0x252   :  { %v1698_v2 = vpop.f32.mrf.mxu1  ;;  %v1904_v37 = vpop.f32.mrf.mxu0 }
 0x253   :  { %v3761_v0 = vadd.f32 %v1881_v63, %v1697_v31 }
 0x254   :  { %v1701_v30 = vpop.f32.mrf.mxu1  ;;  %v1905_v27 = vpop.f32.mrf.mxu0 }
 0x255   :  { %v1702_v58 = vadd.f32 %v1701_v30, %v3621_v18 }
 0x256   :  { %v1703_v8 = vpop.f32.mrf.mxu1  ;;  %v1907_v13 = vpop.f32.mrf.mxu0 }
 0x257   :  { %v3766_v35 = vadd.f32 %v1886_v28, %v1702_v58 }
 0x258   :  { %v1704_v40 = vpop.f32.mrf.mxu1  ;;  %v1910_v32 = vpop.f32.mrf.mxu0 }
 0x259   :  { %v1705_v33 = vadd.f32 %v1704_v40, %v3630_v34 }
 0x25a   :  { %v1706_v51 = vpop.f32.mrf.mxu1  ;;  %v1912_v15 = vpop.f32.mrf.mxu0 }
 0x25b   :  { %v3769_v57 = vadd.f32 %v1889_v25, %v1705_v33 }
 0x25c   :  { %v1709_v63 = vpop.f32.mrf.mxu1  ;;  %v1913_v44 = vpop.f32.mrf.mxu0 }
 0x25d   :  { %v1710_v2 = vadd.f32 %v1709_v63, %v3703_v56 }
 0x25e   :  { %v1711_v18 = vpop.f32.mrf.mxu1  ;;  %v1915_v37 = vpop.f32.mrf.mxu0 }
 0x25f   :  { %v3774_v30 = vadd.f32 %v1894_v61, %v1710_v2 }
 0x260   :  { %v1712_v28 = vpop.f32.mrf.mxu1  ;;  %v1918_v58 = vpop.f32.mrf.mxu0 }
 0x261   :  { %v1713_v8 = vadd.f32 %v1712_v28, %v3705_v49 }
 0x262   :  { %v1714_v34 = vpop.f32.mrf.mxu1  ;;  %v1920_v13 = vpop.f32.mrf.mxu0 }
 0x263   :  { %v3777_v40 = vadd.f32 %v1897_v46, %v1713_v8 }
 0x264   :  { %v1717_v25 = vpop.f32.mrf.mxu1  ;;  %v1921_v33 = vpop.f32.mrf.mxu0 }
 0x265   :  { %v1718_v15 = vadd.f32 %v1717_v25, %v3699_v52 }
 0x266   :  { %v1719_v56 = vpop.f32.mrf.mxu1  ;;  %v1923_v63 = vpop.f32.mrf.mxu0 }
 0x267   :  { %v3782_v18 = vadd.f32 %v1902_v4, %v1718_v15 }
 0x268   :  { %v1720_v61 = vpop.f32.mrf.mxu1  ;;  %v3784_v2 = vpop.f32.mrf.mxu0 }
 0x269   :  { %v1721_v49 = vadd.f32 %v1720_v61, %v3701_v42 }
 0x26a   :  { %v1722_v37 = vpop.f32.mrf.mxu1  ;;  %v1928_v28 = vpop.f32.mrf.mxu0 }
 0x26b   :  { %v3787_v46 = vadd.f32 %v1905_v27, %v1721_v49 }
 0x26c   :  { %v1725_v8 = vpop.f32.mrf.mxu1  ;;  %v3789_v34 = vpop.f32.mrf.mxu0 }
 0x26d   :  { %v1726_v4 = vadd.f32 %v1725_v8, %v3695_v24 }
 0x26e   :  { %v1727_v52 = vpop.f32.mrf.mxu1  ;;  %v1931_v25 = vpop.f32.mrf.mxu0 }
 0x26f   :  { %v3797_v37 = vadd.f32 %v1910_v32, %v1726_v4 }
 0x270   :  { %v1728_v15 = vpop.f32.mrf.mxu1  ;;  %v3794_v56 = vpop.f32.mrf.mxu0 }
 0x271   :  { %v1729_v63 = vadd.f32 %v1728_v15, %v3697_v39 }
 0x272   :  { %v1730_v42 = vpop.f32.mrf.mxu1  ;;  %v1936_v61 = vpop.f32.mrf.mxu0 }
 0x273   :  { %v3799_v27 = vadd.f32 %v1913_v44, %v1729_v63 }
 0x274   :  { %v1733_v49 = vpop.f32.mrf.mxu1  ;;  %v1937_v28 = vpop.f32.mrf.mxu0 }
 0x275   :  { %v1734_v24 = vadd.f32 %v1733_v49, %v3687_v38 }
 0x276   :  { %v1735_v52 = vpop.f32.mrf.mxu1  ;;  %v1939_v25 = vpop.f32.mrf.mxu0 }
 0x277   :  { %v3805_v42 = vadd.f32 %v1918_v58, %v1734_v24 }
 0x278   :  { %v1736_v8 = vpop.f32.mrf.mxu1  ;;  %v1942_v51 = vpop.f32.mrf.mxu0 }
 0x279   :  { %v1737_v29 = vadd.f32 %v1736_v8, %v3689_v20 }
 0x27a   :  { %v1738_v39 = vpop.f32.mrf.mxu1  ;;  %v1944_v15 = vpop.f32.mrf.mxu0 }
 0x27b   :  { %v3807_v32 = vadd.f32 %v1921_v33, %v1737_v29 }
 0x27c   :  { %v1741_v44 = vpop.f32.mrf.mxu1  ;;  %v1945_v4 = vpop.f32.mrf.mxu0 }
 0x27e   :  { %v1743_v61 = vpop.f32.mrf.mxu1  ;;  %v1947_v52 = vpop.f32.mrf.mxu0 }
 0x280   :  { %v1744_v25 = vpop.f32.mrf.mxu1  ;;  %v1950_v13 = vpop.f32.mrf.mxu0 }
 0x282   :  { %v1746_v38 = vpop.f32.mrf.mxu1  ;;  %v1952_v49 = vpop.f32.mrf.mxu0 }
 0x284   :  { %v1749_v47 = vpop.f32.mrf.mxu1  ;;  %v1953_v14 = vpop.f32.mrf.mxu0 }
 0x285   :  { %v1750_v16 = vadd.f32 %v1749_v47, %v3659_v10  ;;  %v3974_v10 = vpack.c.bf16 %v3769_v57, %v3766_v35 }
 0x286   :  { %v1751_v20 = vpop.f32.mrf.mxu1  ;;  %v1955_v8 = vpop.f32.mrf.mxu0 }
 0x288   :  { %v1752_v39 = vpop.f32.mrf.mxu1  ;;  %v3811_v58 = vpop.f32.mrf.mxu0 }
 0x289   :  { %3971 = vst [vmem:[#allocation14_spill] sm:$0xff] %v3811_v58 }
 0x28a   :  { %v1754_v29 = vpop.f32.mrf.mxu1  ;;  %v1960_v33 = vpop.f32.mrf.mxu0 }
 0x28c   :  { %v1757_v24 = vpop.f32.mrf.mxu1  ;;  %v3813_v15 = vpop.f32.mrf.mxu0 }
 0x28d   :  { %3972 = vst [vmem:[#allocation22_spill] sm:$0xff] %v3813_v15  ;;  %v1758_v29 = vadd.f32 %v1757_v24, %v3635_v3 }
 0x28e   :  { %v1759_v5 = vpop.f32.mrf.mxu1  ;;  %v1963_v63 = vpop.f32.mrf.mxu0 }
 0x28f   :  { %v1753_v5 = vadd.f32 %v1752_v39, %v3664_v54  ;;  %v1943_v15 = vadd.f32 %v1942_v51, %v1758_v29 }
 0x290   :  { %v1760_v61 = vpop.f32.mrf.mxu1  ;;  %v3815_v52 = vpop.f32.mrf.mxu0 }
 0x291   :  { %3973 = vst [vmem:[#allocation21_spill] sm:$0xff] %v3815_v52  ;;  %v1761_v20 = vadd.f32 %v1760_v61, %v3643_v50  ;;  %v1938_v24 = vadd.f32 %v1937_v28, %v1753_v5 }
 0x292   :  { %v1762_v7 = vpop.f32.mrf.mxu1  ;;  %v1968_v38 = vpop.f32.mrf.mxu0 }
 0x293   :  { %v1946_v63 = vadd.f32 %v1945_v4, %v1761_v20  ;;  %v1742_v4 = vadd.f32 %v1741_v44, %v3676_v12  ;;  %v3978_v20 = vpack.c.bf16 %v3807_v32, %v3805_v42 }
 0x294   :  { %v1765_v49 = vpop.f32.mrf.mxu1  ;;  %v3817_v48 = vpop.f32.mrf.mxu0 }
 0x295   :  { %v1766_v33 = vadd.f32 %v1765_v49, %v3607_v22  ;;  %v1745_v22 = vadd.f32 %v1744_v25, %v3681_v1  ;;  %v1995_v49 = vpack.c.bf16 %v1946_v63, %v1943_v15  ;;  %v1927_v12 = vadd.f32 %v3784_v2, %v1742_v4 }
 0x296   :  { %v1767_v8 = vpop.f32.mrf.mxu1  ;;  %v1971_v23 = vpop.f32.mrf.mxu0  ;;  %v2011_v29 = vmax.bf16 %v3945_v6, %v3978_v20 }
 0x297   :  { %v1951_v50 = vadd.f32 %v1950_v13, %v1766_v33  ;;  %v1930_v51 = vadd.f32 %v3789_v34, %v1745_v22  ;;  %v2014_v13 = vmax.bf16 %v3945_v6, %v1995_v49  ;;  %v3976_v34 = vpack.c.bf16 %v3753_v36, %v3750_v55  ;;  %v1190_v36 = vpop.permute.xlu1 %1189 }
 0x298   :  { %v1768_v31 = vpop.f32.mrf.mxu1  ;;  %v3822_v60 = vpop.f32.mrf.mxu0  ;;  %v3979_v33 = vpack.c.bf16 %v3731_v9, %v3726_v53  ;;  %v3982_v22 = vpack.c.bf16 %v3787_v46, %v3782_v18  ;;  %v3983_v49 = vpack.c.bf16 %v3715_v41, %v3713_v62 }
 0x299   :  { %v1769_v7 = vadd.f32 %v1768_v31, %v3616_v19  ;;  %v1935_v19 = vadd.f32 %v3794_v56, %v1750_v16  ;;  %v3975_v16 = vpack.c.bf16 %v3761_v0, %v3758_v43  ;;  %v1993_v57 = vpack.c.bf16 %v1930_v51, %v1927_v12  ;;  %v3988_v51 = vld [vmem:[#allocation22_spill] sm:$0xff] }
 0x29a   :  { %v1770_v38 = vpop.f32.mrf.mxu1  ;;  %v1976_v58 = vpop.f32.mrf.mxu0  ;;  %v2005_v39 = vmax.bf16 %v3945_v6, %v3976_v34  ;;  %v3977_v43 = vpack.c.bf16 %v3745_v21, %v3742_v59  ;;  %v2003_v5 = vmax.bf16 %v3945_v6, %v3979_v33  ;;  %v3980_v21 = vpack.c.bf16 %v3799_v27, %v3797_v37 }
 0x29b   :  { %v1954_v61 = vadd.f32 %v1953_v14, %v1769_v7  ;;  %v2007_v14 = vmax.bf16 %v3945_v6, %v3974_v10  ;;  %v1994_v1 = vpack.c.bf16 %v1938_v24, %v1935_v19  ;;  %v2006_v56 = vmax.bf16 %v3945_v6, %v3975_v16  ;;  %v1185_v7 = vpop.permute.xlu0 %1184  ;;  %v1180_v53 = vpop.permute.xlu1 %1179 }
 0x29c   :  { %v3827_v23 = vpop.f32.mrf.mxu1  ;;  %v1977_v3 = vpop.f32.mrf.mxu0  ;;  %v2012_v2 = vmax.bf16 %v3945_v6, %v1993_v57  ;;  %v2004_v0 = vmax.bf16 %v3945_v6, %v3977_v43  ;;  %v2010_v38 = vmax.bf16 %v3945_v6, %v3980_v21  ;;  %v2009_v24 = vmax.bf16 %v3945_v6, %v3982_v22 }
 0x29d   :  { %v1996_v8 = vpack.c.bf16 %v1954_v61, %v1951_v50  ;;  %v2013_v44 = vmax.bf16 %v3945_v6, %v1994_v1  ;;  %v3981_v50 = vpack.c.bf16 %v3721_v45, %v3719_v26 }
 0x29e   :  { %v1775_v52 = vpop.f32.mrf.mxu1  ;;  %v1979_v54 = vpop.f32.mrf.mxu0 }
 0x29f   :  { %v2015_v31 = vmax.bf16 %v3945_v6, %v1996_v8  ;;  %v2002_v61 = vmax.bf16 %v3945_v6, %v3981_v50  ;;  %v1175_v37 = vpop.permute.xlu0 %1174  ;;  %v2001_v8 = vmax.bf16 %v3945_v6, %v3983_v49  ;;  %v1170_v46 = vpop.permute.xlu1 %1169 }
 0x2a0   :  { %v1776_v47 = vpop.f32.mrf.mxu1 }
 0x2a1   :  { %2338 = vmatprep.subr.bf16.mxu1 %v2015_v31  ;;  %v1777_v19 = vadd.f32 %v1776_v47, %v1170_v46  ;;  %v3990_v47 = vld [vmem:[#allocation14_spill] sm:$0xff] }
 0x2a2   :  { %v1778_v28 = vpop.f32.mrf.mxu1  ;;  %2339 = vmatpush3.bf16.msra.mxu1 %v2007_v14  ;;  %v3987_v14 = vmov 0.0  }
 0x2a3   :  { %2340 = vmatprep.subr.bf16.mxu1 %v2014_v13  ;;  %v1165_v41 = vpop.permute.xlu0 %1164  ;;  %v1962_v1 = vadd.f32 %v3988_v51, %v1777_v19 }
 0x2a4   :  { %v1781_v35 = vpop.f32.mrf.mxu1  ;;  %v1774_v10 = vadd.f32 %v3827_v23, %v1165_v41 }
 0x2a5   :  { %v1782_v18 = vadd.f32 %v1781_v35, %v1175_v37 }
 0x2a6   :  { %v1783_v25 = vpop.f32.mrf.mxu1  ;;  %2341 = vmatpush3.bf16.msra.mxu1 %v2006_v56  ;;  %v1959_v28 = vadd.f32 %v3990_v47, %v1774_v10 }
 0x2a7   :  { %2342 = vmatprep.subr.bf16.mxu1 %v2013_v44  ;;  %v3991_v44 = vld [vmem:[#allocation17_spill] sm:$0xff]  ;;  %v2024_v34 = vpop.permute.xlu0 %2023 }
 0x2a8   :  { %v1784_v58 = vpop.f32.mrf.mxu1  ;;  %v2028_v25 = vsub.s32 0, %v3991_v44 }
 0x2a9   :  { %v1785_v26 = vadd.f32 %v1784_v58, %v1180_v53 }
 0x2aa   :  { %v1786_v15 = vpop.f32.mrf.mxu1  ;;  %2343 = vmatpush3.bf16.msra.mxu1 %v2005_v39 }
 0x2ab   :  { %2344 = vmatprep.subr.bf16.mxu1 %v2012_v2  ;;  %v1970_v62 = vadd.f32 %v3817_v48, %v1785_v26  ;;  %v1997_v48 = vpack.c.bf16 %v1962_v1, %v1959_v28  ;;  %v2029_v2 = vrot.slane %v2024_v34, %v2028_v25 }
 0x2ac   :  { %v1789_v52 = vpop.f32.mrf.mxu1 }
 0x2ad   :  { %v1790_v32 = vadd.f32 %v1789_v52, %v1185_v7  ;;  %v2016_v12 = vmax.bf16 %v3945_v6, %v1997_v48 }
 0x2ae   :  { %v1791_v55 = vpop.f32.mrf.mxu1  ;;  %2345 = vmatpush3.bf16.msra.mxu1 %v2004_v0 }
 0x2af   :  { %2346 = vmatprep.subr.bf16.mxu1 %v2011_v29  ;;  %v1975_v27 = vadd.f32 %v3822_v60, %v1790_v32  ;;  %v3985_v60 = vpack.c.bf16 %v3709_v11, %v3707_v17  ;;  %v3989_v17 = vld [vmem:[#allocation15_spill] sm:$0xff] }
 0x2b0   :  { %v1792_v63 = vpop.f32.mrf.mxu1  ;;  %v2053_v16 = vcombine.high %v3989_v17, %v3989_v17 }
 0x2b1   :  { %v1793_v59 = vadd.f32 %v1792_v63, %v1190_v36  ;;  %v2000_v4 = vmax.bf16 %v3945_v6, %v3985_v60 }
 0x2b2   :  { %2347 = vmatpush3.bf16.msra.mxu1 %v2003_v5  ;;  %v1794_v42 = vpop.f32.mrf.mxu1 }
 0x2b3   :  { %2348 = vmatprep.subr.bf16.mxu1 %v2010_v38  ;;  %v1978_v9 = vadd.f32 %v1977_v3, %v1793_v59  ;;  %v3984_v3 = vpack.c.bf16 %v3777_v40, %v3774_v30  ;;  %v3986_v30 = vld [vmem:[#allocation21_spill] sm:$0xff] }
 0x2b4   :  { %v1967_v40 = vadd.f32 %v3986_v30, %v1782_v18 }
 0x2b5   :  { %v1999_v45 = vpack.c.bf16 %v1978_v9, %v1975_v27  ;;  %v2008_v54 = vmax.bf16 %v3945_v6, %v3984_v3 }
 0x2b6   :  { %2349 = vmatpush3.bf16.msra.mxu1 %v2002_v61  ;;  %v1998_v13 = vpack.c.bf16 %v1970_v62, %v1967_v40 }
 0x2b7   :  { %2350 = vmatprep.subr.bf16.mxu1 %v2009_v24  ;;  %v2018_v31 = vmax.bf16 %v3945_v6, %v1999_v45 }
 0x2b8   :  { %v2017_v23 = vmax.bf16 %v3945_v6, %v1998_v13 }
 0x2b9   :  { %v2062_v11 = vsel %vm2060_vm4, %v2018_v31, 0 }
 0x2ba   :  { %2351 = vmatpush3.bf16.msra.mxu1 %v2001_v8 }
 0x2bb   :  { %2352 = vmatprep.subr.bf16.mxu1 %v2008_v54 }
 0x2be   :  { %2353 = vmatpush3.bf16.msra.mxu1 %v2000_v4 }
 0x2bf   :  { %2470 = vmatprep.subr.bf16.mxu1 %v3987_v14 }
 0x2c1   :  { %2097 = vmatmul.mubr.bf16.vlgmr.msra.gmra.mxu1 %v3989_v17 }
 0x2c2   :  { %2471 = vmatpush3.bf16.msra.mxu1 %v2062_v11  ;;  %2476 = vmatprep.mubr.msk.bf16.mxu1 %vm2659_vm1, %v3987_v14 }
 0x2c3   :  { %2472 = vmatprep.subr.bf16.mxu1 %v3987_v14 }
 0x2c6   :  { %2473 = vmatpush3.bf16.msra.mxu1 %v2017_v23 }
 0x2c7   :  { %2474 = vmatprep.subr.bf16.mxu1 %v3987_v14 }
 0x2ca   :  { %2475 = vmatpush3.bf16.msra.mxu1 %v2016_v12 }
 0x2cd   :  { %2477 = vmatmul.mubr.msk.bf16.vlgmr.msra.gmra.mxu1 %vm2056_vm5, %v2053_v16 }
 0x381   :  { %v2354_v56 = vpop.f32.mrf.mxu1 }
 0x383   :  { %v2355_v35 = vpop.f32.mrf.mxu1 }
 0x384   :  { %v2356_v58 = vadd.f32 %v2355_v35, %v2354_v56 }
 0x385   :  { %v2357_v57 = vpop.f32.mrf.mxu1 }
 0x386   :  { %v2099_v15 = vadd.f32 %v2356_v58, %v2029_v2 }
 0x387   :  { %v2358_v39 = vpop.f32.mrf.mxu1 }
 0x38d   :  { %v2138_v43 = vpop.f32.mrf.mxu1 }
 0x38e   :  { %v2139_v6 = vadd.f32 %v2138_v43, %v2099_v15 }
 0x38f   :  { %v2478_v0 = vpop.f32.mrf.mxu1 }
 0x390   :  { %2145 = vst.msk [vmem:[#allocation3] sm:$0x1] %vm2144_vm6, %v2139_v6 }
 0x391   :  { %v2141_v52 = vpop.f32.mrf.mxu1 }
 0x392   :  { %2646 = shalt.err (!%p2643_p4)
}
 0x393   :  { %2155 = dma.vmem_to_hbm [thread:$0]  %s2153_s14, 16, %s3914_s7, [#allocation4]   ;;  %v2479_v20 = vpop.f32.mrf.mxu1 }
 0x394   :  { %2655 = dma.done.wait [#allocation4], 16  }
 0x395   :  { %2656 = vsyncadd [#allocation4], 4294967280 }
 0x396   :  { %2159 = vsyncpa [#allocation4], 1 }

</bundles_post_ra>
